<compile_context>
chip_gen: v7x
topology: tpu7x:2x2x1
jax: 0.10.0
libtpu: 0.0.40
codegen_flags: <defaults>
</compile_context>

<pallas_src>
import functools

import jax
import jax.numpy as jnp
from jax.experimental import pallas as pl
from jax.experimental.pallas import tpu as pltpu


# ----------------------------- activation ----------------------------------


def _snake_alt(x):
    # SnakeAlt(x) = 0.5*x + sin(x)^2  (sin on EUP, 2 mul + 1 add on VPU)
    s = jnp.sin(x)
    return 0.5 * x + s * s


# ------------------------------ kernels -------------------------------------


def _encoder_kernel(x_ref, w0_ref, ws_ref, o_ref, *, num_hidden_layers):
    # First layer: bf16 x bf16 -> f32 accumulate on the MXU (single pass).
    h = jnp.dot(x_ref[...].astype(jnp.bfloat16), w0_ref[...],
                preferred_element_type=jnp.float32)
    h = _snake_alt(h)
    # Remaining layers (statically unrolled; num_layers is small).
    for i in range(num_hidden_layers):
        h = jnp.dot(h.astype(jnp.bfloat16), ws_ref[i],
                    preferred_element_type=jnp.float32)
        h = _snake_alt(h)
    o_ref[...] = h.astype(o_ref.dtype)


def _encoder_kernel_single(x_ref, w0_ref, o_ref):
    h = jnp.dot(x_ref[...].astype(jnp.bfloat16), w0_ref[...],
                preferred_element_type=jnp.float32)
    o_ref[...] = _snake_alt(h).astype(o_ref.dtype)


# -------------------------- weight preparation -------------------------------


def _block_diag(w, p):
    """[a, b] -> [p*a, p*b] block-diagonal with p copies of w."""
    a, b = w.shape
    eye = jnp.eye(p, dtype=w.dtype)
    return (eye[:, None, :, None] * w[None, :, None, :]).reshape(p * a, p * b)


def _block_diag_stack(ws, p):
    """[L, a, b] -> [L, p*a, p*b] block-diagonal per layer."""
    l, a, b = ws.shape
    eye = jnp.eye(p, dtype=ws.dtype)
    return (eye[None, :, None, :, None] * ws[:, None, :, None, :]).reshape(
        l, p * a, p * b)


# --------------------------- chip-aware tuning -------------------------------


def _device_kind():
    try:
        return jax.devices()[0].device_kind.lower()
    except Exception:
        return ""


def _mxu_dim(kind):
    # v2-v5 TensorCores use 128x128 MXU tiles; v6e/v7x use 256x256.
    for tag in ("v2", "v3", "v4", "v5"):
        if tag in kind:
            return 128
    return 256


def _is_multi_tc(kind):
    # Chips where a "parallel" grid axis is split across 2 TensorCores.
    return any(tag in kind for tag in ("v4", "v5p", "v7"))


def _choose_pack(hidden, mxu_dim):
    """Rows folded per slab row: pack*hidden ~= one MXU tile, power of 2, <=8."""
    if hidden >= mxu_dim:
        return 1
    pack = mxu_dim // hidden
    pack = 1 << (pack.bit_length() - 1)          # round down to power of two
    return max(1, min(pack, 8))


# ------------------------------ pallas call ----------------------------------


def _run_pallas(x_slab, w0_b, ws_b, out_cols, tile_s, out_dtype):
    s, in_cols = x_slab.shape
    grid = (pl.cdiv(s, tile_s),)                 # partial last block, no pad
    common = dict(
        out_shape=jax.ShapeDtypeStruct((s, out_cols), out_dtype),
        compiler_params=pltpu.CompilerParams(
            dimension_semantics=("parallel",)),
    )
    if ws_b is None:
        return pl.pallas_call(
            _encoder_kernel_single,
            grid_spec=pltpu.PrefetchScalarGridSpec(
                num_scalar_prefetch=0,
                grid=grid,
                in_specs=[
                    pl.BlockSpec((tile_s, in_cols), lambda i: (i, 0)),
                    pl.BlockSpec((in_cols, out_cols), lambda i: (0, 0)),
                ],
                out_specs=pl.BlockSpec((tile_s, out_cols), lambda i: (i, 0)),
            ),
            **common,
        )(x_slab, w0_b)

    num_hidden = ws_b.shape[0]
    kernel = functools.partial(_encoder_kernel,
                               num_hidden_layers=num_hidden)
    return pl.pallas_call(
        kernel,
        grid_spec=pltpu.PrefetchScalarGridSpec(
            num_scalar_prefetch=0,
            grid=grid,
            in_specs=[
                pl.BlockSpec((tile_s, in_cols), lambda i: (i, 0)),
                pl.BlockSpec((in_cols, out_cols), lambda i: (0, 0)),
                pl.BlockSpec((num_hidden, out_cols, out_cols),
                             lambda i: (0, 0, 0)),
            ],
            out_specs=pl.BlockSpec((tile_s, out_cols), lambda i: (i, 0)),
        ),
        **common,
    )(x_slab, w0_b, ws_b)


# ------------------------------ public API ------------------------------------


def make_encoder(w0, ws, *, tile_rows=1024):
    """Build the encoder forward fn.  Weight prep (block-diag + bf16) runs once.

    w0: [in_ch, hidden] (already transposed so forward is x @ w0)
    ws: [num_layers-1, hidden, hidden] (may have leading dim 0)
    """
    in_ch, hidden = w0.shape
    num_hidden = int(ws.shape[0])

    kind = _device_kind()
    mxu = _mxu_dim(kind)
    multi_tc = _is_multi_tc(kind)
    pack = _choose_pack(hidden, mxu)

    # Hoisted: block-diagonal expansion + bf16 cast, done once per model.
    w0_b = (_block_diag(w0, pack) if pack > 1 else w0).astype(jnp.bfloat16)
    ws_b = None
    if num_hidden > 0:
        ws_b = (_block_diag_stack(ws, pack)
                if pack > 1 else ws).astype(jnp.bfloat16)

    in_cols = pack * in_ch
    out_cols = pack * hidden
    chunk = pack * 8                       # slab granularity: keeps s % 8 == 0
    tile_rows8 = max(8, (tile_rows // 8) * 8)

    def encode(x):
        lead = x.shape[:-1]
        x2 = x.reshape(-1, in_ch)
        n = x2.shape[0]
        n_main = (n // chunk) * chunk
        pieces = []

        if n_main:
            s = n_main // pack             # slab rows (multiple of 8)
            if multi_tc and s >= 16:
                # Keep >= 2 grid steps so the parallel axis splits across TCs.
                target = ((s // 2 + 7) // 8) * 8
            else:
                target = s
            tile_s = max(8, min(tile_rows8, target, s))
            x_slab = x2[:n_main].reshape(s, in_cols)      # free reshape
            out_slab = _run_pallas(x_slab, w0_b, ws_b, out_cols, tile_s,
                                   x.dtype)
            pieces.append(out_slab.reshape(n_main, hidden))

        if n - n_main:
            # Tiny remainder (< pack*8 rows): plain-JAX path, same bf16 math.
            pieces.append(
                reference_encoder_bf16(x2[n_main:], w0, ws).astype(x.dtype))

        out = pieces[0] if len(pieces) == 1 else jnp.concatenate(pieces, 0)
        return out.reshape(*lead, hidden)

    return encode


def pallas_encoder(x, w0, ws, *, tile_rows=1024):
    """Convenience one-shot wrapper (re-prepares weights every call)."""
    return make_encoder(w0, ws, tile_rows=tile_rows)(x)


# ------------------------------ references ------------------------------------


def reference_encoder_bf16(x, w0, ws):
    """Plain-JAX reference with the same bf16-operand / f32-accumulate math."""
    def snake(v):
        s = jnp.sin(v)
        return 0.5 * v + s * s
    h = snake(jnp.dot(x.astype(jnp.bfloat16), w0.astype(jnp.bfloat16),
                      preferred_element_type=jnp.float32))
    for i in range(ws.shape[0]):
        h = snake(jnp.dot(h.astype(jnp.bfloat16), ws[i].astype(jnp.bfloat16),
                          preferred_element_type=jnp.float32))
    return h


def reference_encoder_f32(x, w0, ws):
    def snake(v):
        s = jnp.sin(v)
        return 0.5 * v + s * s
    h = snake(jnp.dot(x, w0))
    for i in range(ws.shape[0]):
        h = snake(jnp.dot(h, ws[i]))
    return h


def init_encoder_params(key, in_channels, hidden_channels, num_layers,
                        dtype=jnp.float32):
    """Deterministic init mimicking nn.Linear default: U(-1/sqrt(fan_in), +)."""
    k0, k1 = jax.random.split(key)
    b0 = 1.0 / (in_channels ** 0.5)
    w0 = jax.random.uniform(k0, (in_channels, hidden_channels),
                            minval=-b0, maxval=b0, dtype=dtype)
    bh = 1.0 / (hidden_channels ** 0.5)
    ws = jax.random.uniform(
        k1, (max(num_layers - 1, 0), hidden_channels, hidden_channels),
        minval=-bh, maxval=bh, dtype=dtype)
    return w0, ws


# --------------------------------- demo ---------------------------------------


if __name__ == "__main__":
    in_channels = 16
    hidden_channels = 32
    num_layers = 3

    key = jax.random.PRNGKey(0)
    kx, kp, kt = jax.random.split(key, 3)

    # x: [batch, points, in_channels] (any leading dims; MLP acts on last axis)
    x = jax.random.normal(kx, (2, 64, in_channels), dtype=jnp.float32)
    w0, ws = init_encoder_params(kp, in_channels, hidden_channels, num_layers)

    encoder = jax.jit(make_encoder(w0, ws))

    out = jax.block_until_ready(encoder(x))
    assert out.shape == (2, 64, hidden_channels)
    ref = reference_encoder_bf16(x, w0, ws)
    assert jnp.allclose(out, ref, atol=1e-2, rtol=1e-2), \
        "mismatch vs bf16-operand reference"
    ref32 = reference_encoder_f32(x, w0, ws)
    assert jnp.allclose(out, ref32, atol=1e-1, rtol=1e-1), \
        "mismatch vs f32 reference (bf16 operand error too large)"

    # Row count not divisible by the slab granularity -> exercises the
    # jnp tail path plus a multi-step / partial-last-block grid.
    xt = jax.random.normal(kt, (3, 47, in_channels), dtype=jnp.float32)
    out_t = jax.block_until_ready(encoder(xt))
    assert out_t.shape == (3, 47, hidden_channels)
    ref_t = reference_encoder_bf16(xt, w0, ws)
    assert jnp.allclose(out_t, ref_t, atol=1e-2, rtol=1e-2), \
        "tail-case mismatch vs bf16-operand reference"

    print("KERNEL_OK")
</pallas_src>

<mosaic_0001>
module attributes {stable_mosaic.version = 11 : i64} {
  func.func @_encoder_kernel(%arg0: i32, %arg1: memref<16x128xf32, #tpu.memory_space<vmem>>, %arg2: memref<128x256xbf16, #tpu.memory_space<vmem>>, %arg3: memref<2x256x256xbf16, #tpu.memory_space<vmem>>, %arg4: memref<16x256xf32, #tpu.memory_space<vmem>>) attributes {dimension_semantics = [#tpu.dimension_semantics<parallel>], iteration_bounds = array<i64: 1>, scalar_prefetch = 0 : i64, scratch_operands = 0 : i64, tpu.core_type = #tpu.core_type<tc>, window_params = [{transform_indices = @transform_0, window_bounds = array<i64: 16, 128>}, {pipeline_mode = #tpu.pipeline_mode<synchronous>, transform_indices = @transform_1, window_bounds = array<i64: 128, 256>}, {pipeline_mode = #tpu.pipeline_mode<synchronous>, transform_indices = @transform_2, window_bounds = array<i64: 2, 256, 256>}, {transform_indices = @transform_3, window_bounds = array<i64: 16, 256>}]} {
    %c0 = arith.constant 0 : index
    %c0_0 = arith.constant 0 : index
    %0 = vector.load %arg1[%c0, %c0_0] : memref<16x128xf32, #tpu.memory_space<vmem>>, vector<16x128xf32>
    %1 = arith.truncf %0 : vector<16x128xf32> to vector<16x128xbf16>
    %c0_1 = arith.constant 0 : index
    %c0_2 = arith.constant 0 : index
    %2 = vector.load %arg2[%c0_1, %c0_2] : memref<128x256xbf16, #tpu.memory_space<vmem>>, vector<128x256xbf16>
    %cst = arith.constant dense<0.000000e+00> : vector<16x256xf32>
    %3 = tpu.matmul %1, %2, %cst {dimension_numbers = #tpu.dot_dimension_numbers<[1], [0], [0], [1], [0, 0, 1, 1], [], []>} : vector<16x128xbf16>, vector<128x256xbf16>, vector<16x256xf32> -> vector<16x256xf32>
    %4 = math.sin %3 : vector<16x256xf32>
    %cst_3 = arith.constant 5.000000e-01 : f32
    %5 = vector.broadcast %cst_3 : f32 to vector<16x256xf32>
    %6 = arith.mulf %5, %3 : vector<16x256xf32>
    %7 = arith.mulf %4, %4 : vector<16x256xf32>
    %8 = arith.addf %6, %7 : vector<16x256xf32>
    %9 = arith.truncf %8 : vector<16x256xf32> to vector<16x256xbf16>
    %c0_4 = arith.constant 0 : index
    %c0_5 = arith.constant 0 : index
    %c0_6 = arith.constant 0 : index
    %10 = vector.load %arg3[%c0_4, %c0_5, %c0_6] : memref<2x256x256xbf16, #tpu.memory_space<vmem>>, vector<1x256x256xbf16>
    %11 = vector.shape_cast %10 : vector<1x256x256xbf16> to vector<256x256xbf16>
    %cst_7 = arith.constant dense<0.000000e+00> : vector<16x256xf32>
    %12 = tpu.matmul %9, %11, %cst_7 {dimension_numbers = #tpu.dot_dimension_numbers<[1], [0], [0], [1], [0, 0, 1, 1], [], []>} : vector<16x256xbf16>, vector<256x256xbf16>, vector<16x256xf32> -> vector<16x256xf32>
    %13 = math.sin %12 : vector<16x256xf32>
    %cst_8 = arith.constant 5.000000e-01 : f32
    %14 = vector.broadcast %cst_8 : f32 to vector<16x256xf32>
    %15 = arith.mulf %14, %12 : vector<16x256xf32>
    %16 = arith.mulf %13, %13 : vector<16x256xf32>
    %17 = arith.addf %15, %16 : vector<16x256xf32>
    %18 = arith.truncf %17 : vector<16x256xf32> to vector<16x256xbf16>
    %c1 = arith.constant 1 : index
    %c0_9 = arith.constant 0 : index
    %c0_10 = arith.constant 0 : index
    %19 = vector.load %arg3[%c1, %c0_9, %c0_10] : memref<2x256x256xbf16, #tpu.memory_space<vmem>>, vector<1x256x256xbf16>
    %20 = vector.shape_cast %19 : vector<1x256x256xbf16> to vector<256x256xbf16>
    %cst_11 = arith.constant dense<0.000000e+00> : vector<16x256xf32>
    %21 = tpu.matmul %18, %20, %cst_11 {dimension_numbers = #tpu.dot_dimension_numbers<[1], [0], [0], [1], [0, 0, 1, 1], [], []>} : vector<16x256xbf16>, vector<256x256xbf16>, vector<16x256xf32> -> vector<16x256xf32>
    %22 = math.sin %21 : vector<16x256xf32>
    %cst_12 = arith.constant 5.000000e-01 : f32
    %23 = vector.broadcast %cst_12 : f32 to vector<16x256xf32>
    %24 = arith.mulf %23, %21 : vector<16x256xf32>
    %25 = arith.mulf %22, %22 : vector<16x256xf32>
    %26 = arith.addf %24, %25 : vector<16x256xf32>
    %c0_13 = arith.constant 0 : index
    %c0_14 = arith.constant 0 : index
    %27 = vector.load %arg4[%c0_13, %c0_14] : memref<16x256xf32, #tpu.memory_space<vmem>>, vector<16x256xf32>
    tpu.vector_store %arg4[%c0_13, %c0_14], %26 {strides = array<i32>} : memref<16x256xf32, #tpu.memory_space<vmem>>, vector<16x256xf32>,
    return
  }
  func.func @transform_0(%arg0: i32) -> (i32, i32) {
    %c0_i32 = arith.constant 0 : i32
    %c0_i32_0 = arith.constant 0 : i32
    return %arg0, %c0_i32 : i32, i32
  }
  func.func @transform_1(%arg0: i32) -> (i32, i32) {
    %c0_i32 = arith.constant 0 : i32
    %c0_i32_0 = arith.constant 0 : i32
    %c0_i32_1 = arith.constant 0 : i32
    return %c0_i32, %c0_i32_0 : i32, i32
  }
  func.func @transform_2(%arg0: i32) -> (i32, i32, i32) {
    %c0_i32 = arith.constant 0 : i32
    %c0_i32_0 = arith.constant 0 : i32
    %c0_i32_1 = arith.constant 0 : i32
    %c0_i32_2 = arith.constant 0 : i32
    return %c0_i32, %c0_i32_0, %c0_i32_1 : i32, i32, i32
  }
  func.func @transform_3(%arg0: i32) -> (i32, i32) {
    %c0_i32 = arith.constant 0 : i32
    %c0_i32_0 = arith.constant 0 : i32
    return %arg0, %c0_i32 : i32, i32
  }
}

</mosaic_0001>

<bundles_post_ra>
// kernel: encode.1
= control target key start
LH: loop header
LB: loop body
LE: loop exit
PB: predicated region body
PF: predicated region fallthrough
CT: control target
= control target key end

     0   :  { %v2307_v1 = vmov 0   ;;  %s3435_s1 = inlined_call_operand.vmem [shape: bf16[128,256], index: 1, kind: input, shape index: {}]   ;;  %s3436_s0 = inlined_call_operand.vmem [shape: f32[16,128], index: 0, kind: input, shape index: {}]   ;;  %s3437_s2 = inlined_call_operand.vmem [shape: bf16[2,256,256], index: 2, kind: input, shape index: {}]   ;;  %s3438_s3 = inlined_call_operand.vmem [shape: f32[16,256], index: 3, kind: output, shape index: {}]  }
   0x1   :  { %v2139_v0 = vld [vmem:[%s3435_s1 + $0x4] ss:$8 sps:$4 sm:$0xff]   ;;  %146 = vmatprep.mubr.bf16.mxu0 %v2307_v1  ;;  %v2141_v2 = vld [vmem:[%s3435_s1] ss:$8 sps:$4 sm:$0xff]   ;;  %v2142_v3 = vld [vmem:[%s3435_s1 + $0x14] ss:$8 sps:$4 sm:$0xff]  }
   0x2   :  { %114 = vmatprep.subr.bf16.mxu0 %v2139_v0  ;;  %v2144_v4 = vld [vmem:[%s3435_s1 + $0x10] ss:$8 sps:$4 sm:$0xff]   ;;  %v2145_v5 = vld [vmem:[%s3435_s1 + $0x24] ss:$8 sps:$4 sm:$0xff]   ;;  %v2147_v6 = vld [vmem:[%s3435_s1 + $0x20] ss:$8 sps:$4 sm:$0xff]  }
   0x3   :  { %115 = vmatpush1.bf16.msra.mxu0 %v2141_v2  ;;  %v2148_v7 = vld [vmem:[%s3435_s1 + $0x34] ss:$8 sps:$4 sm:$0xff]   ;;  %v2150_v8 = vld [vmem:[%s3435_s1 + $0x30] ss:$8 sps:$4 sm:$0xff]   ;;  %v2151_v9 = vld [vmem:[%s3435_s1 + $0x44] ss:$8 sps:$4 sm:$0xff]  }
   0x4   :  { %116 = vmatprep.subr.bf16.mxu0 %v2142_v3  ;;  %v2153_v10 = vld [vmem:[%s3435_s1 + $0x40] ss:$8 sps:$4 sm:$0xff]   ;;  %v2154_v11 = vld [vmem:[%s3435_s1 + $0x54] ss:$8 sps:$4 sm:$0xff]   ;;  %v2156_v12 = vld [vmem:[%s3435_s1 + $0x50] ss:$8 sps:$4 sm:$0xff]  }
   0x5   :  { %v2157_v13 = vld [vmem:[%s3435_s1 + $0x64] ss:$8 sps:$4 sm:$0xff]   ;;  %v2159_v14 = vld [vmem:[%s3435_s1 + $0x60] ss:$8 sps:$4 sm:$0xff]   ;;  %v2160_v15 = vld [vmem:[%s3435_s1 + $0x74] ss:$8 sps:$4 sm:$0xff]  }
   0x6   :  { %v2162_v16 = vld [vmem:[%s3435_s1 + $0x70] ss:$8 sps:$4 sm:$0xff]   ;;  %v15_v17 = vld [vmem:[%s3436_s0] sm:$0xff]  ;;  %v16_v18 = vld [vmem:[%s3436_s0 + $0x8] sm:$0xff] }
   0x7   :  { %117 = vmatpush1.bf16.msra.mxu0 %v2144_v4  ;;  %v17_v19 = vpack.c.bf16 %v16_v18, %v15_v17  ;;  %v2163_v20 = vld [vmem:[%s3437_s2 + $0x4] ss:$8 sps:$4 sm:$0xff]   ;;  %v2165_v21 = vld [vmem:[%s3437_s2] ss:$8 sps:$4 sm:$0xff]   ;;  %v2166_v22 = vld [vmem:[%s3437_s2 + $0x14] ss:$8 sps:$4 sm:$0xff]  }
   0x8   :  { %118 = vmatprep.subr.bf16.mxu0 %v2145_v5  ;;  %779 = vmatprep.subr.bf16.mxu1 %v2163_v20  ;;  %v2168_v23 = vld [vmem:[%s3437_s2 + $0x10] ss:$8 sps:$4 sm:$0xff]   ;;  %v2169_v24 = vld [vmem:[%s3437_s2 + $0x24] ss:$8 sps:$4 sm:$0xff]   ;;  %v2171_v25 = vld [vmem:[%s3437_s2 + $0x20] ss:$8 sps:$4 sm:$0xff]  }
   0x9   :  { %780 = vmatpush1.bf16.msra.mxu1 %v2165_v21  ;;  %v2172_v26 = vld [vmem:[%s3437_s2 + $0x34] ss:$8 sps:$4 sm:$0xff]   ;;  %v2174_v27 = vld [vmem:[%s3437_s2 + $0x30] ss:$8 sps:$4 sm:$0xff]   ;;  %v2175_v28 = vld [vmem:[%s3437_s2 + $0x44] ss:$8 sps:$4 sm:$0xff]  }
   0xa   :  { %781 = vmatprep.subr.bf16.mxu1 %v2166_v22  ;;  %v2177_v29 = vld [vmem:[%s3437_s2 + $0x40] ss:$8 sps:$4 sm:$0xff]   ;;  %v2178_v30 = vld [vmem:[%s3437_s2 + $0x54] ss:$8 sps:$4 sm:$0xff]   ;;  %v2180_v31 = vld [vmem:[%s3437_s2 + $0x50] ss:$8 sps:$4 sm:$0xff]  }
   0xb   :  { %119 = vmatpush1.bf16.msra.mxu0 %v2147_v6  ;;  %v2181_v32 = vld [vmem:[%s3437_s2 + $0x64] ss:$8 sps:$4 sm:$0xff]   ;;  %v2183_v33 = vld [vmem:[%s3437_s2 + $0x60] ss:$8 sps:$4 sm:$0xff]   ;;  %v2184_v34 = vld [vmem:[%s3437_s2 + $0x74] ss:$8 sps:$4 sm:$0xff]  }
   0xc   :  { %120 = vmatprep.subr.bf16.mxu0 %v2148_v7  ;;  %v2186_v35 = vld [vmem:[%s3437_s2 + $0x70] ss:$8 sps:$4 sm:$0xff]   ;;  %v2187_v36 = vld [vmem:[%s3437_s2 + $0x84] ss:$8 sps:$4 sm:$0xff]   ;;  %v2189_v37 = vld [vmem:[%s3437_s2 + $0x80] ss:$8 sps:$4 sm:$0xff]  }
   0xd   :  { %782 = vmatpush1.bf16.msra.mxu1 %v2168_v23  ;;  %v2190_v38 = vld [vmem:[%s3437_s2 + $0x94] ss:$8 sps:$4 sm:$0xff]   ;;  %v2192_v39 = vld [vmem:[%s3437_s2 + $0x90] ss:$8 sps:$4 sm:$0xff]   ;;  %v2193_v40 = vld [vmem:[%s3437_s2 + $0xa4] ss:$8 sps:$4 sm:$0xff]  }
   0xe   :  { %783 = vmatprep.subr.bf16.mxu1 %v2169_v24  ;;  %v2195_v41 = vld [vmem:[%s3437_s2 + $0xa0] ss:$8 sps:$4 sm:$0xff]   ;;  %v2196_v42 = vld [vmem:[%s3437_s2 + $0xb4] ss:$8 sps:$4 sm:$0xff]   ;;  %v2198_v44 = vld [vmem:[%s3437_s2 + $0xb0] ss:$8 sps:$4 sm:$0xff]  }
   0xf   :  { %121 = vmatpush1.bf16.msra.mxu0 %v2150_v8  ;;  %v2199_v48 = vld [vmem:[%s3437_s2 + $0xc4] ss:$8 sps:$4 sm:$0xff]   ;;  %v2201_v57 = vld [vmem:[%s3437_s2 + $0xc0] ss:$8 sps:$4 sm:$0xff]   ;;  %v2202_v60 = vld [vmem:[%s3437_s2 + $0xd4] ss:$8 sps:$4 sm:$0xff]  }
  0x10   :  { %122 = vmatprep.subr.bf16.mxu0 %v2151_v9  ;;  %v2204_v1 = vld [vmem:[%s3437_s2 + $0xd0] ss:$8 sps:$4 sm:$0xff]   ;;  %v2205_v6 = vld [vmem:[%s3437_s2 + $0xe4] ss:$8 sps:$4 sm:$0xff]   ;;  %v2308_v18 = vmov 683565275  }
  0x11   :  { %784 = vmatpush1.bf16.msra.mxu1 %v2171_v25  ;;  %v2208_v22 = vld [vmem:[%s3437_s2 + $0xf4] ss:$8 sps:$4 sm:$0xff]   ;;  %v2309_v23 = vmov 2475754826   ;;  %v2310_v25 = vmov 2131351028  }
  0x12   :  { %785 = vmatprep.subr.bf16.mxu1 %v2172_v26 }
  0x13   :  { %123 = vmatpush1.bf16.msra.mxu0 %v2153_v10 }
  0x14   :  { %124 = vmatprep.subr.bf16.mxu0 %v2154_v11 }
  0x15   :  { %786 = vmatpush1.bf16.msra.mxu1 %v2174_v27  ;;  %v2311_v27 = vmov 2102212464  }
  0x16   :  { %787 = vmatprep.subr.bf16.mxu1 %v2175_v28 }
  0x17   :  { %125 = vmatpush1.bf16.msra.mxu0 %v2156_v12  ;;  %v2207_v12 = vld [vmem:[%s3437_s2 + $0xe0] ss:$8 sps:$4 sm:$0xff]  }
  0x18   :  { %126 = vmatprep.subr.bf16.mxu0 %v2157_v13 }
  0x19   :  { %788 = vmatpush1.bf16.msra.mxu1 %v2177_v29  ;;  %v2312_v29 = vmov 920167782  }
  0x1a   :  { %789 = vmatprep.subr.bf16.mxu1 %v2178_v30 }
  0x1b   :  { %127 = vmatpush1.bf16.msra.mxu0 %v2159_v14 }
  0x1c   :  { %128 = vmatprep.subr.bf16.mxu0 %v2160_v15 }
  0x1d   :  { %790 = vmatpush1.bf16.msra.mxu1 %v2180_v31 }
  0x1e   :  { %791 = vmatprep.subr.bf16.mxu1 %v2181_v32 }
  0x1f   :  { %129 = vmatpush1.bf16.msra.mxu0 %v2162_v16 }
  0x21   :  { %792 = vmatpush1.bf16.msra.mxu1 %v2183_v33 }
  0x22   :  { %147 = vmatmul.mubr.bf16.vlgmr.msra.gmra.mrb[0].mxu0 %v17_v19  ;;  %793 = vmatprep.subr.bf16.mxu1 %v2184_v34 }
  0x25   :  { %794 = vmatpush1.bf16.msra.mxu1 %v2186_v35 }
  0x26   :  { %795 = vmatprep.subr.bf16.mxu1 %v2187_v36  ;;  %v2313_v36 = vmov 1326507024  }
  0x29   :  { %796 = vmatpush1.bf16.msra.mxu1 %v2189_v37 }
  0x2a   :  { %797 = vmatprep.subr.bf16.mxu1 %v2190_v38  ;;  %v2210_v38 = vld [vmem:[%s3437_s2 + $0xf0] ss:$8 sps:$4 sm:$0xff]  }
  0x2d   :  { %798 = vmatpush1.bf16.msra.mxu1 %v2192_v39 }
  0x2e   :  { %799 = vmatprep.subr.bf16.mxu1 %v2193_v40 }
  0x31   :  { %800 = vmatpush1.bf16.msra.mxu1 %v2195_v41 }
  0x32   :  { %801 = vmatprep.subr.bf16.mxu1 %v2196_v42 }
  0x35   :  { %802 = vmatpush1.bf16.msra.mxu1 %v2198_v44 }
  0x36   :  { %803 = vmatprep.subr.bf16.mxu1 %v2199_v48 }
  0x39   :  { %804 = vmatpush1.bf16.msra.mxu1 %v2201_v57 }
  0x3a   :  { %805 = vmatprep.subr.bf16.mxu1 %v2202_v60 }
  0x3d   :  { %806 = vmatpush1.bf16.msra.mxu1 %v2204_v1 }
  0x3e   :  { %807 = vmatprep.subr.bf16.mxu1 %v2205_v6 }
  0x41   :  { %808 = vmatpush1.bf16.msra.mxu1 %v2207_v12 }
  0x42   :  { %809 = vmatprep.subr.bf16.mxu1 %v2208_v22 }
  0x45   :  { %810 = vmatpush1.bf16.msra.mxu1 %v2210_v38 }
  0xf5   :  { %v2457_v43 = vpop.f32.mrb[0].mxu0 }
  0xf6   :  { %v157_v45 = vand.u32 2147483647, %v2457_v43  ;;  %v160_v46 = vand.u32 2139095040, %v2457_v43  ;;  %v2464_v47 = vpop.f32.mrb[1].mxu0 }
  0xf7   :  { %v261_v49 = vand.u32 2147483647, %v2464_v47  ;;  %v264_v50 = vand.u32 2139095040, %v2464_v47  ;;  %v2471_v51 = vpop.f32.mrb[2].mxu0 }
  0xf8   :  { %v161_v52 = vshrl.u32 %v160_v46, 23  ;;  %v164_v53 = vand.u32 8388607, %v157_v45  ;;  %v368_v56 = vand.u32 2139095040, %v2471_v51  ;;  %v2481_v59 = vpop.f32.mrb[3].mxu0 }
  0xf9   :  { %v265_v54 = vshrl.u32 %v264_v50, 23  ;;  %v268_v55 = vand.u32 8388607, %v261_v49  ;;  %v365_v4 = vand.u32 2147483647, %v2471_v51  ;;  %v472_v16 = vand.u32 2139095040, %v2481_v59 }
  0xfa   :  { %v1940_v58 = vadd.s32 4294967169, %v161_v52  ;;  %v369_v62 = vshrl.u32 %v368_v56, 23  ;;  %v165_v63 = vor.u32 8388608, %v164_v53 }
  0xfb   :  { %v1944_v61 = vadd.s32 4294967169, %v265_v54  ;;  %v269_v2 = vor.u32 8388608, %v268_v55  ;;  %v2504_v14 = vand.u32 8388607, %v365_v4 }
  0xfc   :  { %v167_v0 = vadd.s32 1, %v1940_v58  ;;  %v1948_v5 = vadd.s32 4294967169, %v369_v62  ;;  %v2495_v10 = vshll.u32 %v165_v63, 8 }
  0xfd   :  { %v271_v3 = vadd.s32 1, %v1944_v61  ;;  %v2500_v13 = vshll.u32 %v269_v2, 8 }
  0xfe   :  { %vm168_vm0 = vcmp.gt.s32.totalorder %v167_v0, 0  ;;  %v2506_v15 = vadd.s32 1, %v1948_v5 }
  0xff   :  { %v169_v7 = vsel %vm168_vm0, %v167_v0, 0  ;;  %vm272_vm1 = vcmp.gt.s32.totalorder %v271_v3, 0 }
 0x100   :  { %v2493_v8 = vshrl.u32 %v169_v7, 5  ;;  %v171_v9 = vand.u32 31, %v169_v7  ;;  %v273_v11 = vsel %vm272_vm1, %v271_v3, 0  ;;  %vm376_vm6 = vcmp.gt.s32.totalorder %v2506_v15, 0 }
 0x101   :  { %v2510_v20 = vshrl.u32 %v273_v11, 5  ;;  %v2512_v21 = vand.u32 31, %v273_v11 }
 0x102   :  { %v172_v17 = vsub.s32 32, %v171_v9  ;;  %v174_v19 = vshll.u32 %v2308_v18, %v171_v9  ;;  %v177_v24 = vshll.u32 %v2309_v23, %v171_v9  ;;  %v180_v26 = vshll.u32 %v2310_v25, %v171_v9 }
 0x103   :  { %v183_v28 = vshll.u32 %v2311_v27, %v171_v9  ;;  %v186_v30 = vshll.u32 %v2312_v29, %v171_v9  ;;  %vm189_vm2 = vcmp.lt.s32.totalorder %v2493_v8, 1  ;;  %vm190_vm3 = vcmp.lt.s32.totalorder %v2493_v8, 2 }
 0x104   :  { %v175_v31 = vshrl.u32 %v2309_v23, %v172_v17  ;;  %v178_v32 = vshrl.u32 %v2310_v25, %v172_v17  ;;  %v181_v33 = vshrl.u32 %v2311_v27, %v172_v17  ;;  %v173_v34 = vshrl.u32 %v2308_v18, %v172_v17 }
 0x105   :  { %v184_v35 = vshrl.u32 %v2312_v29, %v172_v17  ;;  %v187_v37 = vshrl.u32 %v2313_v36, %v172_v17  ;;  %v276_v42 = vsub.s32 32, %v2512_v21  ;;  %vm191_vm4 = vcmp.lt.s32.totalorder %v2493_v8, 3 }
 0x106   :  { %v176_v39 = vor.u32 %v175_v31, %v174_v19  ;;  %v179_v40 = vor.u32 %v178_v32, %v177_v24  ;;  %v182_v41 = vor.u32 %v181_v33, %v180_v26  ;;  %vm192_vm5 = vcmp.lt.s32.totalorder %v2493_v8, 4 }
 0x107   :  { %v185_v44 = vor.u32 %v184_v35, %v183_v28  ;;  %v188_v46 = vor.u32 %v187_v37, %v186_v30  ;;  %v278_v57 = vshll.u32 %v2308_v18, %v2512_v21  ;;  %v279_v61 = vshrl.u32 %v2309_v23, %v276_v42 }
 0x108   :  { %v193_v48 = vsel %vm189_vm2, %v173_v34, %v176_v39  ;;  %v194_v50 = vsel %vm192_vm5, %v182_v41, 2102212464  ;;  %v197_v52 = vsel %vm189_vm2, %v176_v39, %v179_v40  ;;  %v201_v53 = vsel %vm189_vm2, %v179_v40, %v182_v41 }
 0x109   :  { %v195_v54 = vsel %vm191_vm4, %v179_v40, %v194_v50  ;;  %v198_v55 = vsel %vm192_vm5, %v185_v44, 920167782  ;;  %v202_v56 = vsel %vm192_vm5, %v188_v46, 1326507024  ;;  %v281_v62 = vshll.u32 %v2309_v23, %v2512_v21 }
 0x10a   :  { %v199_v58 = vsel %vm191_vm4, %v182_v41, %v198_v55  ;;  %v203_v60 = vsel %vm191_vm4, %v185_v44, %v202_v56  ;;  %v196_v63 = vsel %vm190_vm3, %v193_v48, %v195_v54  ;;  %v282_v2 = vshrl.u32 %v2310_v25, %v276_v42 }
 0x10b   :  { %v200_v0 = vsel %vm190_vm3, %v197_v52, %v199_v58  ;;  %v204_v1 = vsel %vm190_vm3, %v201_v53, %v203_v60  ;;  %v280_v9 = vor.u32 %v279_v61, %v278_v57  ;;  %v284_v12 = vshll.u32 %v2310_v25, %v2512_v21 }
 0x10c   :  { %v2555_v3 = vmul.u32.u64.low %v2495_v10, %v204_v1  ;;  %v2556_v5 = vmul.u32.u64.high %v2495_v10, %v204_v1, %v2555_v3  ;;  %v2559_v6 = vmul.u32.u64.low %v2495_v10, %v200_v0  ;;  %v2560_v7 = vmul.u32.u64.high %v2495_v10, %v200_v0, %v2559_v6 }
 0x10d   :  { %v283_v11 = vor.u32 %v282_v2, %v281_v62  ;;  %v285_v17 = vshrl.u32 %v2311_v27, %v276_v42  ;;  %v277_v8 = vshrl.u32 %v2308_v18, %v276_v42  ;;  %v287_v19 = vshll.u32 %v2311_v27, %v2512_v21 }
 0x10e   :  { %v288_v22 = vshrl.u32 %v2312_v29, %v276_v42  ;;  %v291_v24 = vshrl.u32 %v2313_v36, %v276_v42  ;;  %v212_v26 = vmul.u32 %v2495_v10, %v196_v63  ;;  %v290_v30 = vshll.u32 %v2312_v29, %v2512_v21 }
 0x10f   :  { %v286_v28 = vor.u32 %v285_v17, %v284_v12  ;;  %vm293_vm7 = vcmp.lt.s32.totalorder %v2510_v20, 1  ;;  %vm214_vm8 = vc.u32 %v2556_v5, %v2559_v6  ;;  %v215_v31 = vadd.s32 1, %v2560_v7 }
 0x110   :  { %v289_v32 = vor.u32 %v288_v22, %v287_v19  ;;  %vm294_vm9 = vcmp.lt.s32.totalorder %v2510_v20, 2  ;;  %v292_v33 = vor.u32 %v291_v24, %v290_v30  ;;  %vm295_vm10 = vcmp.lt.s32.totalorder %v2510_v20, 3 }
 0x111   :  { %vm296_vm11 = vcmp.lt.s32.totalorder %v2510_v20, 4  ;;  %v301_v10 = vsel %vm293_vm7, %v280_v9, %v283_v11  ;;  %v216_v34 = vsel %vm214_vm8, %v215_v31, %v2560_v7  ;;  %v305_v37 = vsel %vm293_vm7, %v283_v11, %v286_v28 }
 0x112   :  { %v298_v35 = vsel %vm296_vm11, %v286_v28, 2102212464  ;;  %v302_v21 = vsel %vm296_vm11, %v289_v32, 920167782  ;;  %v217_v38 = vadd.s32 %v216_v34, %v212_v26  ;;  %v297_v39 = vsel %vm293_vm7, %v277_v8, %v280_v9 }
 0x113   :  { %v303_v40 = vsel %vm295_vm10, %v286_v28, %v302_v21  ;;  %v306_v41 = vsel %vm296_vm11, %v292_v33, 1326507024  ;;  %v299_v42 = vsel %vm295_vm10, %v283_v11, %v298_v35  ;;  %v377_v48 = vsel %vm376_vm6, %v2506_v15, 0 }
 0x114   :  { %v304_v44 = vsel %vm294_vm9, %v301_v10, %v303_v40  ;;  %v307_v46 = vsel %vm295_vm10, %v289_v32, %v306_v41  ;;  %v218_v50 = vadd.s32 536870912, %v217_v38  ;;  %v300_v58 = vsel %vm294_vm9, %v297_v39, %v299_v42 }
 0x115   :  { %v308_v52 = vsel %vm294_vm9, %v305_v37, %v307_v46  ;;  %v2590_v53 = vmul.u32.u64.low %v2500_v13, %v304_v44  ;;  %v2591_v54 = vmul.u32.u64.high %v2500_v13, %v304_v44, %v2590_v53  ;;  %v373_v15 = vor.u32 8388608, %v2504_v14 }
 0x116   :  { %v2595_v55 = vmul.u32.u64.low %v2500_v13, %v308_v52  ;;  %v2596_v56 = vmul.u32.u64.high %v2500_v13, %v308_v52, %v2595_v55  ;;  %v2598_v57 = vshrl.u32 %v218_v50, 30  ;;  %v379_v60 = vand.u32 31, %v377_v48 }
 0x117   :  { %v319_v62 = vadd.s32 1, %v2591_v54  ;;  %v473_v0 = vshrl.u32 %v472_v16, 23  ;;  %v316_v1 = vmul.u32 %v2500_v13, %v300_v58  ;;  %v378_v2 = vshrl.u32 %v377_v48, 5 }
 0x118   :  { %v220_v61 = vshll.u32 %v2598_v57, 30  ;;  %v380_v63 = vsub.s32 32, %v379_v60  ;;  %vm318_vm12 = vc.u32 %v2596_v56, %v2590_v53  ;;  %v382_v14 = vshll.u32 %v2308_v18, %v379_v60 }
 0x119   :  { %v320_v20 = vsel %vm318_vm12, %v319_v62, %v2591_v54  ;;  %v2614_v7 = vshll.u32 %v373_v15, 8  ;;  %v385_v12 = vshll.u32 %v2309_v23, %v379_v60  ;;  %v388_v17 = vshll.u32 %v2310_v25, %v379_v60 }
 0x11a   :  { %v2610_v3 = vsub.s32 %v217_v38, %v220_v61  ;;  %v321_v9 = vadd.s32 %v320_v20, %v316_v1  ;;  %v383_v11 = vshrl.u32 %v2309_v23, %v380_v63  ;;  %v386_v16 = vshrl.u32 %v2310_v25, %v380_v63 }
 0x11b   :  { %v389_v8 = vshrl.u32 %v2311_v27, %v380_v63  ;;  %v1952_v19 = vadd.s32 4294967169, %v473_v0  ;;  %vm397_vm13 = vcmp.lt.s32.totalorder %v378_v2, 1  ;;  %v391_v31 = vshll.u32 %v2311_v27, %v379_v60 }
 0x11c   :  { %v223_v13 = vsub.s32 0, %v2610_v3  ;;  %v322_v22 = vadd.s32 536870912, %v321_v9  ;;  %v384_v24 = vor.u32 %v383_v11, %v382_v14  ;;  %v387_v26 = vor.u32 %v386_v16, %v385_v12 }
 0x11d   :  { %v390_v30 = vor.u32 %v389_v8, %v388_v17  ;;  %v392_v32 = vshrl.u32 %v2312_v29, %v380_v63  ;;  %v394_v10 = vshll.u32 %v2312_v29, %v379_v60  ;;  %v395_v34 = vshrl.u32 %v2313_v36, %v380_v63 }
 0x11e   :  { %v1941_v28 = vmin.u32 %v223_v13, %v2610_v3  ;;  %v2625_v33 = vshrl.u32 %v322_v22, 30  ;;  %vm398_vm14 = vcmp.lt.s32.totalorder %v378_v2, 2  ;;  %vm399_vm15 = vcmp.lt.s32.totalorder %v378_v2, 3 }
 0x11f   :  { %v393_v21 = vor.u32 %v392_v32, %v391_v31  ;;  %vm400_vm0 = vcmp.lt.s32.totalorder %v378_v2, 4  ;;  %v381_v38 = vshrl.u32 %v2308_v18, %v380_v63  ;;  %v396_v39 = vor.u32 %v395_v34, %v394_v10 }
 0x120   :  { %v225_v35 = vclz %v1941_v28  ;;  %v324_v37 = vshll.u32 %v2625_v33, 30  ;;  %v405_v40 = vsel %vm397_vm13, %v384_v24, %v387_v26  ;;  %v409_v44 = vsel %vm397_vm13, %v387_v26, %v390_v30 }
 0x121   :  { %v406_v42 = vsel %vm400_vm0, %v393_v21, 920167782  ;;  %v479_v46 = vadd.s32 1, %v1952_v19  ;;  %v402_v50 = vsel %vm400_vm0, %v390_v30, 2102212464  ;;  %v401_v0 = vsel %vm397_vm13, %v381_v38, %v384_v24 }
 0x122   :  { %v1942_v41 = vadd.s32 4294967294, %v225_v35  ;;  %v2633_v48 = vsub.s32 %v321_v9, %v324_v37  ;;  %v407_v52 = vsel %vm399_vm15, %v390_v30, %v406_v42  ;;  %v410_v54 = vsel %vm400_vm0, %v396_v39, 1326507024 }
 0x123   :  { %v408_v55 = vsel %vm398_vm14, %v405_v40, %v407_v52  ;;  %v411_v58 = vsel %vm399_vm15, %v393_v21, %v410_v54  ;;  %vm480_vm2 = vcmp.gt.s32.totalorder %v479_v46, 0  ;;  %v403_v1 = vsel %vm399_vm15, %v387_v26, %v402_v50 }
 0x124   :  { %vm1943_vm1 = vcmp.lt.s32.totalorder %v1942_v41, 0  ;;  %v327_v60 = vsub.s32 0, %v2633_v48  ;;  %v412_v61 = vsel %vm398_vm14, %v409_v44, %v411_v58  ;;  %v481_v62 = vsel %vm480_vm2, %v479_v46, 0 }
 0x125   :  { %v228_v15 = vsel %vm1943_vm1, 0, %v1942_v41  ;;  %v2644_v14 = vmul.u32.u64.low %v2614_v7, %v412_v61  ;;  %v2645_v9 = vmul.u32.u64.high %v2614_v7, %v412_v61, %v2644_v14  ;;  %v483_v11 = vand.u32 31, %v481_v62 }
 0x126   :  { %v233_v63 = vsub.s32 4294967266, %v228_v15  ;;  %v1945_v20 = vmin.u32 %v327_v60, %v2633_v48  ;;  %v2648_v16 = vmul.u32.u64.low %v2614_v7, %v408_v55  ;;  %v2649_v13 = vmul.u32.u64.high %v2614_v7, %v408_v55, %v2648_v16 }
 0x127   :  { %v229_v8 = vsub.s32 32, %v228_v15  ;;  %v404_v19 = vsel %vm398_vm14, %v401_v0, %v403_v1  ;;  %v469_v22 = vand.u32 2147483647, %v2481_v59  ;;  %v484_v26 = vsub.s32 32, %v483_v11 }
 0x128   :  { %v234_v12 = vadd.s32 127, %v233_v63  ;;  %v329_v17 = vclz %v1945_v20  ;;  %vm422_vm3 = vc.u32 %v2645_v9, %v2648_v16  ;;  %v213_v28 = vadd.s32 %v2559_v6, %v2556_v5 }
 0x129   :  { %v423_v30 = vadd.s32 1, %v2649_v13  ;;  %v420_v32 = vmul.u32 %v2614_v7, %v404_v19  ;;  %v476_v2 = vand.u32 8388607, %v469_v22  ;;  %v487_v37 = vshrl.u32 %v2309_v23, %v484_v26 }
 0x12a   :  { %v235_v24 = vshll.u32 %v234_v12, 23  ;;  %v1946_v31 = vadd.s32 4294967294, %v329_v17  ;;  %v231_v10 = vshrl.u32 %v213_v28, %v229_v8  ;;  %v490_v38 = vshrl.u32 %v2310_v25, %v484_v26 }
 0x12b   :  { %v424_v34 = vsel %vm422_vm3, %v423_v30, %v2649_v13  ;;  %v230_v39 = vshll.u32 %v2610_v3, %v228_v15  ;;  %v482_v5 = vshrl.u32 %v481_v62, 5  ;;  %v493_v6 = vshrl.u32 %v2311_v27, %v484_v26 }
 0x12c   :  { %v236_v35 = vor.u32 4788187, %v235_v24  ;;  %v425_v21 = vadd.s32 %v424_v34, %v420_v32  ;;  %v496_v40 = vshrl.u32 %v2312_v29, %v484_v26  ;;  %vm1947_vm4 = vcmp.lt.s32.totalorder %v1946_v31, 0 }
 0x12d   :  { %v486_v41 = vshll.u32 %v2308_v18, %v483_v11  ;;  %v489_v42 = vshll.u32 %v2309_v23, %v483_v11  ;;  %v232_v44 = vor.u32 %v231_v10, %v230_v39  ;;  %v492_v46 = vshll.u32 %v2310_v25, %v483_v11 }
 0x12e   :  { %v426_v7 = vadd.s32 536870912, %v425_v21  ;;  %v495_v50 = vshll.u32 %v2311_v27, %v483_v11  ;;  %v499_v52 = vshrl.u32 %v2313_v36, %v484_v26  ;;  %v237_v54 = vand.u32 2147483647, %v236_v35 }
 0x12f   :  { %v488_v55 = vor.u32 %v487_v37, %v486_v41  ;;  %v491_v58 = vor.u32 %v490_v38, %v489_v42  ;;  %v2675_v15 = vsel %vm1947_vm4, 0, %v1946_v31  ;;  %v494_v60 = vor.u32 %v493_v6, %v492_v46 }
 0x130   :  { %v2673_v3 = vshrl.u32 %v426_v7, 30  ;;  %v497_v61 = vor.u32 %v496_v40, %v495_v50  ;;  %v498_v62 = vshll.u32 %v2312_v29, %v483_v11  ;;  %v477_v0 = vor.u32 8388608, %v476_v2 }
 0x131   :  { %v239_v1 = vcvt.s32.f32 %v232_v44  ;;  %v485_v20 = vshrl.u32 %v2308_v18, %v484_v26  ;;  %vm501_vm5 = vcmp.lt.s32.totalorder %v482_v5, 1  ;;  %v337_v12 = vsub.s32 4294967266, %v2675_v15 }
 0x132   :  { %v428_v63 = vshll.u32 %v2673_v3, 30  ;;  %v500_v14 = vor.u32 %v499_v52, %v498_v62  ;;  %vm504_vm6 = vcmp.lt.s32.totalorder %v482_v5, 4  ;;  %v509_v17 = vsel %vm501_vm5, %v488_v55, %v491_v58 }
 0x133   :  { %v240_v8 = vmul.f32 %v239_v1, %v237_v54  ;;  %vm503_vm7 = vcmp.lt.s32.totalorder %v482_v5, 3  ;;  %v506_v19 = vsel %vm504_vm6, %v494_v60, 2102212464  ;;  %v510_v24 = vsel %vm504_vm6, %v497_v61, 920167782 }
 0x134   :  { %v429_v13 = vsub.s32 %v425_v21, %v428_v63  ;;  %vm502_vm8 = vcmp.lt.s32.totalorder %v482_v5, 2  ;;  %v511_v11 = vsel %vm503_vm7, %v494_v60, %v510_v24  ;;  %v513_v30 = vsel %vm501_vm5, %v491_v58, %v494_v60 }
 0x135   :  { %v512_v31 = vsel %vm502_vm8, %v509_v17, %v511_v11  ;;  %v514_v26 = vsel %vm504_vm6, %v500_v14, 1326507024  ;;  %v517_v32 = vshll.u32 %v477_v0, 8  ;;  %v505_v34 = vsel %vm501_vm5, %v485_v20, %v488_v55 }
 0x136   :  { %v431_v28 = vsub.s32 0, %v429_v13  ;;  %v507_v2 = vsel %vm503_vm7, %v491_v58, %v506_v19  ;;  %v515_v35 = vsel %vm503_vm7, %v497_v61, %v514_v26  ;;  %v338_v21 = vadd.s32 127, %v337_v12 }
 0x137   :  { %v516_v37 = vsel %vm502_vm8, %v513_v30, %v515_v35  ;;  %v2686_v38 = vmul.u32.u64.low %v517_v32, %v512_v31  ;;  %v2687_v39 = vmul.u32.u64.high %v517_v32, %v512_v31, %v2686_v38  ;;  %v241_v6 = vxor.u32 2147483648, %v240_v8 }
 0x138   :  { %v1949_v10 = vmin.u32 %v431_v28, %v429_v13  ;;  %v2690_v7 = vmul.u32.u64.low %v517_v32, %v516_v37  ;;  %v2691_v41 = vmul.u32.u64.high %v517_v32, %v516_v37, %v2690_v7  ;;  %v333_v42 = vsub.s32 32, %v2675_v15 }
 0x139   :  { %v508_v44 = vsel %vm502_vm8, %v505_v34, %v507_v2  ;;  %vm159_vm9 = vcmp.lt.s32.totalorder %v2457_v43, 0  ;;  %v317_v50 = vadd.s32 %v2590_v53, %v2596_v56  ;;  %v339_v52 = vshll.u32 %v338_v21, 23 }
 0x13a   :  { %v433_v40 = vclz %v1949_v10  ;;  %v527_v54 = vadd.s32 1, %v2687_v39  ;;  %v242_v55 = vsel %vm159_vm9, %v241_v6, %v240_v8  ;;  %v524_v58 = vmul.u32 %v517_v32, %v508_v44 }
 0x13b   :  { %vm526_vm11 = vc.u32 %v2691_v41, %v2686_v38  ;;  %vm2705_vm12 = vcmp.le.f32.partialorder %v157_v45, 0.7853982  ;;  %v335_v60 = vshrl.u32 %v317_v50, %v333_v42  ;;  %v421_v56 = vadd.s32 %v2648_v16, %v2645_v9 }
 0x13c   :  { %v1950_v46 = vadd.s32 4294967294, %v433_v40  ;;  %v528_v53 = vsel %vm526_vm11, %v527_v54, %v2687_v39  ;;  %v243_v1 = vsub.s32 4, %v2598_v57  ;;  %v245_v20 = vsel %vm2705_vm12, %v2457_v43, %v242_v55 }
 0x13d   :  { %v529_v0 = vadd.s32 %v528_v53, %v524_v58  ;;  %v334_v45 = vshll.u32 %v2633_v48, %v2675_v15  ;;  %v340_v14 = vor.u32 4788187, %v339_v52  ;;  %2259 = vsinq.f32 %v245_v20 }
 0x13e   :  { %vm1951_vm10 = vcmp.lt.s32.totalorder %v1950_v46, 0  ;;  %2261 = vcosq.f32 %v245_v20  ;;  %v244_v11 = vsel %vm159_vm9, %v243_v1, %v2598_v57  ;;  %v451_v34 = vsub.s32 4, %v2673_v3 }
 0x13f   :  { %v436_v61 = vsel %vm1951_vm10, 0, %v1950_v46  ;;  %v530_v19 = vadd.s32 536870912, %v529_v0  ;;  %v336_v24 = vor.u32 %v335_v60, %v334_v45  ;;  %v341_v30 = vand.u32 2147483647, %v340_v14 }
 0x140   :  { %v437_v62 = vsub.s32 32, %v436_v61  ;;  %v441_v63 = vsub.s32 4294967266, %v436_v61  ;;  %v438_v12 = vshll.u32 %v429_v13, %v436_v61  ;;  %v246_v10 = vsel %vm2705_vm12, 0, %v244_v11 }
 0x141   :  { %v2718_v28 = vshrl.u32 %v530_v19, 30  ;;  %v343_v15 = vcvt.s32.f32 %v336_v24  ;;  %v250_v37 = vadd.s32 3, %v246_v10  ;;  %vm367_vm13 = vcmp.lt.s32.totalorder %v2471_v51, 0 }
 0x142   :  { %v439_v17 = vshrl.u32 %v421_v56, %v437_v62  ;;  %v442_v8 = vadd.s32 127, %v441_v63  ;;  %v452_v6 = vsel %vm367_vm13, %v451_v34, %v2673_v3  ;;  %vm2731_vm14 = vcmp.le.f32.partialorder %v365_v4, 0.7853982 }
 0x143   :  { %v532_v48 = vshll.u32 %v2718_v28, 30  ;;  %v344_v2 = vmul.f32 %v343_v15, %v341_v30  ;;  %v251_v54 = vand.u32 3, %v250_v37  ;;  %v454_v55 = vsel %vm2731_vm14, 0, %v452_v6 }
 0x144   :  { %v440_v9 = vor.u32 %v439_v17, %v438_v12  ;;  %v443_v16 = vshll.u32 %v442_v8, 23  ;;  %vm263_vm15 = vcmp.lt.s32.totalorder %v2464_v47, 0  ;;  %vm2745_vm1 = vcmp.le.f32.partialorder %v261_v49, 0.7853982 }
 0x145   :  { %v533_v32 = vsub.s32 %v529_v0, %v532_v48  ;;  %v345_v7 = vxor.u32 2147483648, %v344_v2  ;;  %v458_v61 = vadd.s32 3, %v454_v55  ;;  %v525_v56 = vadd.s32 %v2686_v38, %v2691_v41 }
 0x146   :  { %v444_v31 = vor.u32 4788187, %v443_v16  ;;  %v447_v26 = vcvt.s32.f32 %v440_v9  ;;  %vm253_vm2 = vcmp.eq.s32.totalorder %v251_v54, 0  ;;  %v347_v1 = vsub.s32 4, %v2625_v33 }
 0x147   :  { %v535_v21 = vsub.s32 0, %v533_v32  ;;  %v2260_v40 = vpop.eup %2259  ;;  %v346_v58 = vsel %vm263_vm15, %v345_v7, %v344_v2  ;;  %vm256_vm3 = vcmp.eq.s32.totalorder %v251_v54, 2  ;;  %v459_v17 = vand.u32 3, %v458_v61 }
 0x148   :  { %v445_v13 = vand.u32 2147483647, %v444_v31  ;;  %v2262_v50 = vpop.eup %2261  ;;  %v254_v4 = vxor.u32 2147483648, %v2260_v40  ;;  %v349_v0 = vsel %vm2745_vm1, %v2464_v47, %v346_v58  ;;  %vm252_vm4 = vcmp.lt.s32.totalorder %v251_v54, 2 }
 0x149   :  { %v1953_v39 = vmin.u32 %v535_v21, %v533_v32  ;;  %v257_v5 = vxor.u32 2147483648, %v2262_v50  ;;  %v348_v9 = vsel %vm263_vm15, %v347_v1, %v2625_v33  ;;  %vm249_vm5 = vweird.f32 %v2457_v43 }
 0x14a   :  { %v448_v35 = vmul.f32 %v447_v26, %v445_v13  ;;  %v255_v20 = vsel %vm253_vm2, %v2262_v50, %v254_v4  ;;  %vm464_vm6 = vcmp.eq.s32.totalorder %v459_v17, 2  ;;  %v350_v13 = vsel %vm2745_vm1, 0, %v348_v9  ;;  %v2217_v9 = vld [vmem:[%s3437_s2 + $0x120] ss:$8 sps:$4 sm:$0xff]  }
 0x14b   :  { %v537_v46 = vclz %v1953_v39  ;;  %v258_v12 = vsel %vm256_vm3, %v257_v5, %v2260_v40  ;;  %vm461_vm7 = vcmp.eq.s32.totalorder %v459_v17, 0  ;;  %v555_v10 = vsub.s32 4, %v2718_v28 }
 0x14c   :  { %v449_v57 = vxor.u32 2147483648, %v448_v35  ;;  %v259_v38 = vsel %vm252_vm4, %v255_v20, %v258_v12  ;;  %vm460_vm8 = vcmp.lt.s32.totalorder %v459_v17, 2  ;;  %vm457_vm9 = vweird.f32 %v2471_v51 }
 0x14d   :  { %v1954_v3 = vadd.s32 4294967294, %v537_v46  ;;  %v260_v48 = vsel %vm249_vm5, nan, %v259_v38  ;;  %vm471_vm10 = vcmp.lt.s32.totalorder %v2481_v59, 0  ;;  %v354_v37 = vadd.s32 3, %v350_v13  ;;  %v2213_v38 = vld [vmem:[%s3437_s2 + $0x104] ss:$8 sps:$4 sm:$0xff]  }
 0x14e   :  { %v450_v44 = vsel %vm367_vm13, %v449_v57, %v448_v35  ;;  %v577_v2 = vmul.f32 %v260_v48, %v260_v48  ;;  %v573_v57 = vmul.f32 0.5, %v2457_v43  ;;  %v575_v39 = vmul.f32 0.5, %v2471_v51  ;;  %1445 = vmatprep.subr.bf16.mxu0 %v2213_v38  ;;  %v2228_v48 = vld [vmem:[%s3437_s2 + $0x154] ss:$8 sps:$4 sm:$0xff]   ;;  %v2231_v13 = vld [vmem:[%s3437_s2 + $0x164] ss:$8 sps:$4 sm:$0xff]  }
 0x14f   :  { %v453_v52 = vsel %vm2731_vm14, %v2471_v51, %v450_v44  ;;  %vm1955_vm0 = vcmp.lt.s32.totalorder %v1954_v3, 0  ;;  %vm470_vm11 = vcmp.le.f32.partialorder %v469_v22, 0.7853982  ;;  %v556_v42 = vsel %vm471_vm10, %v555_v10, %v2718_v28  ;;  %v2232_v10 = vld [vmem:[%s3437_s2 + $0x170] ss:$8 sps:$4 sm:$0xff]  }
 0x150   :  { %2263 = vcosq.f32 %v453_v52  ;;  %v540_v53 = vsel %vm1955_vm0, 0, %v1954_v3  ;;  %v581_v50 = vadd.f32 %v577_v2, %v573_v57  ;;  %v355_v54 = vand.u32 3, %v354_v37  ;;  %v2240_v2 = vld [vmem:[%s3437_s2 + $0x194] ss:$8 sps:$4 sm:$0xff]   ;;  %v2241_v37 = vld [vmem:[%s3437_s2 + $0x1a0] ss:$8 sps:$4 sm:$0xff]  }
 0x151   :  { %2265 = vsinq.f32 %v453_v52  ;;  %v541_v62 = vsub.s32 32, %v540_v53  ;;  %v545_v63 = vsub.s32 4294967266, %v540_v53  ;;  %v542_v49 = vshll.u32 %v533_v32, %v540_v53  ;;  %v2246_v57 = vld [vmem:[%s3437_s2 + $0x1b4] ss:$8 sps:$4 sm:$0xff]  }
 0x152   :  { %2267 = vcosq.f32 %v349_v0  ;;  %v558_v55 = vsel %vm470_vm11, 0, %v556_v42  ;;  %vm357_vm12 = vcmp.eq.s32.totalorder %v355_v54, 0  ;;  %vm360_vm13 = vcmp.eq.s32.totalorder %v355_v54, 2 }
 0x153   :  { %v543_v45 = vshrl.u32 %v525_v56, %v541_v62  ;;  %v546_v14 = vadd.s32 127, %v545_v63  ;;  %2269 = vsinq.f32 %v349_v0  ;;  %v562_v4 = vadd.s32 3, %v558_v55 }
 0x154   :  { %vm356_vm14 = vcmp.lt.s32.totalorder %v355_v54, 2  ;;  %vm353_vm15 = vweird.f32 %v2464_v47  ;;  %vm561_vm3 = vweird.f32 %v2481_v59 }
 0x155   :  { %v544_v8 = vor.u32 %v543_v45, %v542_v49  ;;  %v547_v19 = vshll.u32 %v546_v14, 23  ;;  %v563_v5 = vand.u32 3, %v562_v4  ;;  %v574_v45 = vmul.f32 0.5, %v2464_v47  ;;  %v2216_v47 = vld [vmem:[%s3437_s2 + $0x114] ss:$8 sps:$4 sm:$0xff]  }
 0x156   :  { %v576_v14 = vmul.f32 0.5, %v2481_v59 }
 0x157   :  { %v548_v24 = vor.u32 4788187, %v547_v19  ;;  %v551_v31 = vcvt.s32.f32 %v544_v8  ;;  %vm568_vm0 = vcmp.eq.s32.totalorder %v563_v5, 2  ;;  %vm565_vm1 = vcmp.eq.s32.totalorder %v563_v5, 0 }
 0x158   :  { %vm564_vm2 = vcmp.lt.s32.totalorder %v563_v5, 2 }
 0x159   :  { %v549_v30 = vand.u32 2147483647, %v548_v24  ;;  %v2219_v24 = vld [vmem:[%s3437_s2 + $0x124] ss:$8 sps:$4 sm:$0xff]  }
 0x15a   :  { %v2264_v41 = vpop.eup %2263 }
 0x15b   :  { %v2266_v16 = vpop.eup %2265  ;;  %v465_v11 = vxor.u32 2147483648, %v2264_v41  ;;  %v552_v32 = vmul.f32 %v551_v31, %v549_v30  ;;  %v2225_v30 = vld [vmem:[%s3437_s2 + $0x144] ss:$8 sps:$4 sm:$0xff]   ;;  %v2223_v31 = vld [vmem:[%s3437_s2 + $0x140] ss:$8 sps:$4 sm:$0xff]  }
 0x15c   :  { %v462_v15 = vxor.u32 2147483648, %v2266_v16  ;;  %v2268_v40 = vpop.eup %2267 }
 0x15d   :  { %v466_v26 = vsel %vm464_vm6, %v465_v11, %v2266_v16  ;;  %v553_v35 = vxor.u32 2147483648, %v552_v32  ;;  %v2270_v44 = vpop.eup %2269  ;;  %v361_v51 = vxor.u32 2147483648, %v2268_v40  ;;  %v2222_v16 = vld [vmem:[%s3437_s2 + $0x134] ss:$8 sps:$4 sm:$0xff]   ;;  %v2220_v11 = vld [vmem:[%s3437_s2 + $0x130] ss:$8 sps:$4 sm:$0xff]  }
 0x15e   :  { %v463_v34 = vsel %vm461_vm7, %v2264_v41, %v462_v15  ;;  %v358_v3 = vxor.u32 2147483648, %v2270_v44  ;;  %v2211_v41 = vld [vmem:[%s3437_s2 + $0x100] ss:$8 sps:$4 sm:$0xff]   ;;  %v2226_v15 = vld [vmem:[%s3437_s2 + $0x150] ss:$8 sps:$4 sm:$0xff]  }
 0x15f   :  { %v467_v33 = vsel %vm460_vm8, %v463_v34, %v466_v26  ;;  %v554_v7 = vsel %vm471_vm10, %v553_v35, %v552_v32  ;;  %v362_v22 = vsel %vm360_vm13, %v361_v51, %v2270_v44  ;;  %1446 = vmatpush1.bf16.msra.mxu0 %v2211_v41  ;;  %v2229_v26 = vld [vmem:[%s3437_s2 + $0x160] ss:$8 sps:$4 sm:$0xff]   ;;  %v2234_v32 = vld [vmem:[%s3437_s2 + $0x174] ss:$8 sps:$4 sm:$0xff]   ;;  %v2237_v34 = vld [vmem:[%s3437_s2 + $0x184] ss:$8 sps:$4 sm:$0xff]  }
 0x160   :  { %v468_v21 = vsel %vm457_vm9, nan, %v467_v33  ;;  %v557_v46 = vsel %vm470_vm11, %v2481_v59, %v554_v7  ;;  %v359_v58 = vsel %vm357_vm12, %v2268_v40, %v358_v3  ;;  %v2214_v59 = vld [vmem:[%s3437_s2 + $0x110] ss:$8 sps:$4 sm:$0xff]   ;;  %1447 = vmatprep.subr.bf16.mxu0 %v2216_v47  ;;  %v2235_v33 = vld [vmem:[%s3437_s2 + $0x180] ss:$8 sps:$4 sm:$0xff]  }
 0x161   :  { %v579_v6 = vmul.f32 %v468_v21, %v468_v21  ;;  %2271 = vcosq.f32 %v557_v46  ;;  %v363_v28 = vsel %vm356_vm14, %v359_v58, %v362_v22  ;;  %v2238_v35 = vld [vmem:[%s3437_s2 + $0x190] ss:$8 sps:$4 sm:$0xff]   ;;  %v2243_v21 = vld [vmem:[%s3437_s2 + $0x1a4] ss:$8 sps:$4 sm:$0xff]   ;;  %v2247_v40 = vld [vmem:[%s3437_s2 + $0x1c0] ss:$8 sps:$4 sm:$0xff]  }
 0x162   :  { %2273 = vsinq.f32 %v557_v46  ;;  %v364_v56 = vsel %vm353_vm15, nan, %v363_v28  ;;  %v2252_v7 = vld [vmem:[%s3437_s2 + $0x1d4] ss:$8 sps:$4 sm:$0xff]   ;;  %v2255_v51 = vld [vmem:[%s3437_s2 + $0x1e4] ss:$8 sps:$4 sm:$0xff]  }
 0x163   :  { %v583_v52 = vadd.f32 %v579_v6, %v575_v39  ;;  %v578_v20 = vmul.f32 %v364_v56, %v364_v56  ;;  %1448 = vmatpush1.bf16.msra.mxu0 %v2214_v59  ;;  %v2244_v39 = vld [vmem:[%s3437_s2 + $0x1b0] ss:$8 sps:$4 sm:$0xff]   ;;  %v2249_v6 = vld [vmem:[%s3437_s2 + $0x1c4] ss:$8 sps:$4 sm:$0xff]   ;;  %v2253_v56 = vld [vmem:[%s3437_s2 + $0x1e0] ss:$8 sps:$4 sm:$0xff]  }
 0x164   :  { %1449 = vmatprep.subr.bf16.mxu0 %v2219_v24 }
 0x165   :  { %v585_v43 = vpack.c.bf16 %v583_v52, %v581_v50  ;;  %v582_v17 = vadd.f32 %v578_v20, %v574_v45 }
 0x167   :  { %1450 = vmatpush1.bf16.msra.mxu0 %v2217_v9 }
 0x168   :  { %1451 = vmatprep.subr.bf16.mxu0 %v2222_v16 }
 0x16b   :  { %v2272_v60 = vpop.eup %2271  ;;  %1452 = vmatpush1.bf16.msra.mxu0 %v2220_v11 }
 0x16c   :  { %v2274_v61 = vpop.eup %2273  ;;  %v569_v53 = vxor.u32 2147483648, %v2272_v60  ;;  %1453 = vmatprep.subr.bf16.mxu0 %v2225_v30 }
 0x16d   :  { %v566_v62 = vxor.u32 2147483648, %v2274_v61 }
 0x16e   :  { %v570_v63 = vsel %vm568_vm0, %v569_v53, %v2274_v61 }
 0x16f   :  { %v567_v0 = vsel %vm565_vm1, %v2272_v60, %v566_v62  ;;  %1454 = vmatpush1.bf16.msra.mxu0 %v2223_v31 }
 0x170   :  { %v571_v1 = vsel %vm564_vm2, %v567_v0, %v570_v63  ;;  %1455 = vmatprep.subr.bf16.mxu0 %v2228_v48  ;;  %v2258_v63 = vld [vmem:[%s3437_s2 + $0x1f4] ss:$8 sps:$4 sm:$0xff]  }
 0x171   :  { %v572_v49 = vsel %vm561_vm3, nan, %v571_v1 }
 0x172   :  { %v580_v12 = vmul.f32 %v572_v49, %v572_v49 }
 0x173   :  { %1456 = vmatpush1.bf16.msra.mxu0 %v2226_v15 }
 0x174   :  { %v584_v8 = vadd.f32 %v580_v12, %v576_v14  ;;  %1457 = vmatprep.subr.bf16.mxu0 %v2231_v13  ;;  %v2256_v14 = vld [vmem:[%s3437_s2 + $0x1f0] ss:$8 sps:$4 sm:$0xff]  }
 0x176   :  { %v586_v19 = vpack.c.bf16 %v584_v8, %v582_v17 }
 0x177   :  { %1458 = vmatpush1.bf16.msra.mxu0 %v2229_v26 }
 0x178   :  { %811 = vmatprep.mubr.bf16.mxu1 %v586_v19  ;;  %1459 = vmatprep.subr.bf16.mxu0 %v2234_v32 }
 0x179   :  { %812 = vmatmul.mubr.bf16.vlgmr.msra.gmra.mrb[0].mxu1 %v585_v43  ;;  %v2250_v43 = vld [vmem:[%s3437_s2 + $0x1d0] ss:$8 sps:$4 sm:$0xff]  }
 0x17b   :  { %1460 = vmatpush1.bf16.msra.mxu0 %v2232_v10 }
 0x17c   :  { %1461 = vmatprep.subr.bf16.mxu0 %v2237_v34 }
 0x17f   :  { %1462 = vmatpush1.bf16.msra.mxu0 %v2235_v33 }
 0x180   :  { %1463 = vmatprep.subr.bf16.mxu0 %v2240_v2 }
 0x183   :  { %1464 = vmatpush1.bf16.msra.mxu0 %v2238_v35 }
 0x184   :  { %1465 = vmatprep.subr.bf16.mxu0 %v2243_v21 }
 0x187   :  { %1466 = vmatpush1.bf16.msra.mxu0 %v2241_v37 }
 0x188   :  { %1467 = vmatprep.subr.bf16.mxu0 %v2246_v57 }
 0x18b   :  { %1468 = vmatpush1.bf16.msra.mxu0 %v2244_v39 }
 0x18c   :  { %1469 = vmatprep.subr.bf16.mxu0 %v2249_v6 }
 0x18f   :  { %1470 = vmatpush1.bf16.msra.mxu0 %v2247_v40 }
 0x190   :  { %1471 = vmatprep.subr.bf16.mxu0 %v2252_v7 }
 0x193   :  { %1472 = vmatpush1.bf16.msra.mxu0 %v2250_v43 }
 0x194   :  { %1473 = vmatprep.subr.bf16.mxu0 %v2255_v51 }
 0x197   :  { %1474 = vmatpush1.bf16.msra.mxu0 %v2253_v56 }
 0x198   :  { %1475 = vmatprep.subr.bf16.mxu0 %v2258_v63 }
 0x19b   :  { %1476 = vmatpush1.bf16.msra.mxu0 %v2256_v14 }
 0x24c   :  { %v2855_v42 = vpop.f32.mrb[0].mxu1 }
 0x24d   :  { %v822_v44 = vand.u32 2147483647, %v2855_v42  ;;  %v825_v46 = vand.u32 2139095040, %v2855_v42  ;;  %v2859_v50 = vpop.f32.mrb[1].mxu1 }
 0x24e   :  { %v926_v52 = vand.u32 2147483647, %v2859_v50  ;;  %v929_v54 = vand.u32 2139095040, %v2859_v50  ;;  %v2863_v55 = vpop.f32.mrb[2].mxu1 }
 0x24f   :  { %v826_v3 = vshrl.u32 %v825_v46, 23  ;;  %v829_v4 = vand.u32 8388607, %v822_v44  ;;  %v1033_v5 = vand.u32 2139095040, %v2863_v55  ;;  %v2876_v60 = vpop.f32.mrb[3].mxu1 }
 0x250   :  { %v930_v58 = vshrl.u32 %v929_v54, 23  ;;  %v933_v22 = vand.u32 8388607, %v926_v52  ;;  %v1030_v41 = vand.u32 2147483647, %v2863_v55 }
 0x251   :  { %v1988_v28 = vadd.s32 4294967169, %v826_v3  ;;  %v1034_v53 = vshrl.u32 %v1033_v5, 23  ;;  %v830_v0 = vor.u32 8388608, %v829_v4 }
 0x252   :  { %v1992_v61 = vadd.s32 4294967169, %v930_v58  ;;  %v934_v1 = vor.u32 8388608, %v933_v22 }
 0x253   :  { %v832_v62 = vadd.s32 1, %v1988_v28  ;;  %v1996_v49 = vadd.s32 4294967169, %v1034_v53  ;;  %v2887_v19 = vshll.u32 %v830_v0, 8 }
 0x254   :  { %v936_v20 = vadd.s32 1, %v1992_v61  ;;  %v2889_v38 = vshll.u32 %v934_v1, 8 }
 0x255   :  { %vm833_vm4 = vcmp.gt.s32.totalorder %v832_v62, 0  ;;  %v2892_v47 = vadd.s32 1, %v1996_v49 }
 0x256   :  { %v834_v45 = vsel %vm833_vm4, %v832_v62, 0  ;;  %vm937_vm5 = vcmp.gt.s32.totalorder %v936_v20, 0 }
 0x257   :  { %v835_v12 = vshrl.u32 %v834_v45, 5  ;;  %v836_v17 = vand.u32 31, %v834_v45  ;;  %v938_v8 = vsel %vm937_vm5, %v936_v20, 0  ;;  %vm1041_vm10 = vcmp.gt.s32.totalorder %v2892_v47, 0 }
 0x258   :  { %v2895_v9 = vshrl.u32 %v938_v8, 5  ;;  %v940_v16 = vand.u32 31, %v938_v8 }
 0x259   :  { %v837_v59 = vsub.s32 32, %v836_v17  ;;  %v839_v24 = vshll.u32 %v2308_v18, %v836_v17  ;;  %v842_v11 = vshll.u32 %v2309_v23, %v836_v17  ;;  %v845_v30 = vshll.u32 %v2310_v25, %v836_v17 }
 0x25a   :  { %v848_v31 = vshll.u32 %v2311_v27, %v836_v17  ;;  %v851_v48 = vshll.u32 %v2312_v29, %v836_v17  ;;  %vm854_vm6 = vcmp.lt.s32.totalorder %v835_v12, 1  ;;  %vm855_vm7 = vcmp.lt.s32.totalorder %v835_v12, 2 }
 0x25b   :  { %v840_v15 = vshrl.u32 %v2309_v23, %v837_v59  ;;  %v843_v13 = vshrl.u32 %v2310_v25, %v837_v59  ;;  %v846_v26 = vshrl.u32 %v2311_v27, %v837_v59  ;;  %v838_v32 = vshrl.u32 %v2308_v18, %v837_v59 }
 0x25c   :  { %v849_v10 = vshrl.u32 %v2312_v29, %v837_v59  ;;  %v852_v34 = vshrl.u32 %v2313_v36, %v837_v59  ;;  %v941_v21 = vsub.s32 32, %v940_v16  ;;  %vm856_vm8 = vcmp.lt.s32.totalorder %v835_v12, 3 }
 0x25d   :  { %v841_v33 = vor.u32 %v840_v15, %v839_v24  ;;  %v844_v2 = vor.u32 %v843_v13, %v842_v11  ;;  %v847_v35 = vor.u32 %v846_v26, %v845_v30  ;;  %vm857_vm9 = vcmp.lt.s32.totalorder %v835_v12, 4 }
 0x25e   :  { %v850_v37 = vor.u32 %v849_v10, %v848_v31  ;;  %v853_v57 = vor.u32 %v852_v34, %v851_v48  ;;  %v943_v3 = vshll.u32 %v2308_v18, %v940_v16  ;;  %v944_v58 = vshrl.u32 %v2309_v23, %v941_v21 }
 0x25f   :  { %v858_v39 = vsel %vm854_vm6, %v838_v32, %v841_v33  ;;  %v859_v6 = vsel %vm857_vm9, %v847_v35, 2102212464  ;;  %v862_v40 = vsel %vm854_vm6, %v841_v33, %v844_v2  ;;  %v866_v7 = vsel %vm854_vm6, %v844_v2, %v847_v35 }
 0x260   :  { %v860_v46 = vsel %vm856_vm8, %v844_v2, %v859_v6  ;;  %v863_v54 = vsel %vm857_vm9, %v850_v37, 920167782  ;;  %v867_v43 = vsel %vm857_vm9, %v853_v57, 1326507024  ;;  %v946_v22 = vshll.u32 %v2309_v23, %v940_v16 }
 0x261   :  { %v864_v51 = vsel %vm856_vm8, %v847_v35, %v863_v54  ;;  %v868_v4 = vsel %vm856_vm8, %v850_v37, %v867_v43  ;;  %v861_v5 = vsel %vm855_vm7, %v858_v39, %v860_v46  ;;  %v947_v53 = vshrl.u32 %v2310_v25, %v941_v21 }
 0x262   :  { %v865_v28 = vsel %vm855_vm7, %v862_v40, %v864_v51  ;;  %v869_v61 = vsel %vm855_vm7, %v866_v7, %v868_v4  ;;  %v945_v1 = vor.u32 %v944_v58, %v943_v3  ;;  %v949_v49 = vshll.u32 %v2310_v25, %v940_v16 }
 0x263   :  { %v2919_v56 = vmul.u32.u64.low %v2887_v19, %v869_v61  ;;  %v2920_v62 = vmul.u32.u64.high %v2887_v19, %v869_v61, %v2919_v56  ;;  %v2923_v63 = vmul.u32.u64.low %v2887_v19, %v865_v28  ;;  %v2924_v0 = vmul.u32.u64.high %v2887_v19, %v865_v28, %v2923_v63 }
 0x264   :  { %v948_v20 = vor.u32 %v947_v53, %v946_v22  ;;  %v950_v45 = vshrl.u32 %v2311_v27, %v941_v21  ;;  %v942_v14 = vshrl.u32 %v2308_v18, %v941_v21  ;;  %v952_v12 = vshll.u32 %v2311_v27, %v940_v16 }
 0x265   :  { %v953_v17 = vshrl.u32 %v2312_v29, %v941_v21  ;;  %v956_v8 = vshrl.u32 %v2313_v36, %v941_v21  ;;  %v877_v59 = vmul.u32 %v2887_v19, %v861_v5  ;;  %v955_v11 = vshll.u32 %v2312_v29, %v940_v16 }
 0x266   :  { %v951_v24 = vor.u32 %v950_v45, %v949_v49  ;;  %vm958_vm11 = vcmp.lt.s32.totalorder %v2895_v9, 1  ;;  %vm879_vm12 = vc.u32 %v2920_v62, %v2923_v63  ;;  %v880_v30 = vadd.s32 1, %v2924_v0 }
 0x267   :  { %v954_v31 = vor.u32 %v953_v17, %v952_v12  ;;  %vm959_vm13 = vcmp.lt.s32.totalorder %v2895_v9, 2  ;;  %v957_v48 = vor.u32 %v956_v8, %v955_v11  ;;  %vm960_vm14 = vcmp.lt.s32.totalorder %v2895_v9, 3 }
 0x268   :  { %vm961_vm15 = vcmp.lt.s32.totalorder %v2895_v9, 4  ;;  %v966_v15 = vsel %vm958_vm11, %v945_v1, %v948_v20  ;;  %v881_v19 = vsel %vm879_vm12, %v880_v30, %v2924_v0  ;;  %v970_v26 = vsel %vm958_vm11, %v948_v20, %v951_v24 }
 0x269   :  { %v963_v13 = vsel %vm961_vm15, %v951_v24, 2102212464  ;;  %v967_v16 = vsel %vm961_vm15, %v954_v31, 920167782  ;;  %v882_v32 = vadd.s32 %v881_v19, %v877_v59  ;;  %v962_v10 = vsel %vm958_vm11, %v942_v14, %v945_v1 }
 0x26a   :  { %v968_v34 = vsel %vm960_vm14, %v951_v24, %v967_v16  ;;  %v971_v33 = vsel %vm961_vm15, %v957_v48, 1326507024  ;;  %v964_v2 = vsel %vm960_vm14, %v948_v20, %v963_v13  ;;  %v1042_v37 = vsel %vm1041_vm10, %v2892_v47, 0 }
 0x26b   :  { %v969_v35 = vsel %vm959_vm13, %v966_v15, %v968_v34  ;;  %v972_v21 = vsel %vm960_vm14, %v954_v31, %v971_v33  ;;  %v883_v57 = vadd.s32 536870912, %v882_v32  ;;  %v1037_v54 = vand.u32 8388607, %v1030_v41 }
 0x26c   :  { %v973_v39 = vsel %vm959_vm13, %v970_v26, %v972_v21  ;;  %v2951_v6 = vmul.u32.u64.low %v2889_v38, %v969_v35  ;;  %v2952_v40 = vmul.u32.u64.high %v2889_v38, %v969_v35, %v2951_v6  ;;  %v965_v47 = vsel %vm959_vm13, %v962_v10, %v964_v2 }
 0x26d   :  { %v2956_v7 = vmul.u32.u64.low %v2889_v38, %v973_v39  ;;  %v2957_v46 = vmul.u32.u64.high %v2889_v38, %v973_v39, %v2956_v7  ;;  %v2961_v43 = vshrl.u32 %v883_v57, 30  ;;  %v1044_v3 = vand.u32 31, %v1042_v37 }
 0x26e   :  { %v1137_v51 = vand.u32 2139095040, %v2876_v60  ;;  %v984_v58 = vadd.s32 1, %v2952_v40  ;;  %v981_v5 = vmul.u32 %v2889_v38, %v965_v47  ;;  %v1038_v28 = vor.u32 8388608, %v1037_v54 }
 0x26f   :  { %v885_v4 = vshll.u32 %v2961_v43, 30  ;;  %v1045_v22 = vsub.s32 32, %v1044_v3  ;;  %vm983_vm0 = vc.u32 %v2957_v46, %v2951_v6  ;;  %v1047_v9 = vshll.u32 %v2308_v18, %v1044_v3 }
 0x270   :  { %v985_v53 = vsel %vm983_vm0, %v984_v58, %v2952_v40  ;;  %v1138_v56 = vshrl.u32 %v1137_v51, 23  ;;  %v1050_v20 = vshll.u32 %v2309_v23, %v1044_v3  ;;  %v1043_v45 = vshrl.u32 %v1042_v37, 5 }
 0x271   :  { %v2971_v61 = vsub.s32 %v882_v32, %v885_v4  ;;  %v986_v0 = vadd.s32 %v985_v53, %v981_v5  ;;  %v1048_v1 = vshrl.u32 %v2309_v23, %v1045_v22  ;;  %v1051_v49 = vshrl.u32 %v2310_v25, %v1045_v22 }
 0x272   :  { %v1053_v14 = vshll.u32 %v2310_v25, %v1044_v3  ;;  %v1054_v12 = vshrl.u32 %v2311_v27, %v1045_v22  ;;  %v1056_v30 = vshll.u32 %v2311_v27, %v1044_v3  ;;  %v1057_v31 = vshrl.u32 %v2312_v29, %v1045_v22 }
 0x273   :  { %v888_v38 = vsub.s32 0, %v2971_v61  ;;  %v987_v17 = vadd.s32 536870912, %v986_v0  ;;  %v1049_v8 = vor.u32 %v1048_v1, %v1047_v9  ;;  %v1052_v59 = vor.u32 %v1051_v49, %v1050_v20 }
 0x274   :  { %v1055_v11 = vor.u32 %v1054_v12, %v1053_v14  ;;  %v1059_v15 = vshll.u32 %v2312_v29, %v1044_v3  ;;  %v1060_v19 = vshrl.u32 %v2313_v36, %v1045_v22  ;;  %v1078_v13 = vshll.u32 %v1038_v28, 8 }
 0x275   :  { %v1989_v24 = vmin.u32 %v888_v38, %v2971_v61  ;;  %v2984_v48 = vshrl.u32 %v987_v17, 30  ;;  %v1058_v26 = vor.u32 %v1057_v31, %v1056_v30  ;;  %vm1062_vm1 = vcmp.lt.s32.totalorder %v1043_v45, 1 }
 0x276   :  { %v2000_v32 = vadd.s32 4294967169, %v1138_v56  ;;  %v1061_v34 = vor.u32 %v1060_v19, %v1059_v15  ;;  %vm1064_vm2 = vcmp.lt.s32.totalorder %v1043_v45, 3  ;;  %vm1065_vm3 = vcmp.lt.s32.totalorder %v1043_v45, 4 }
 0x277   :  { %v890_v16 = vclz %v1989_v24  ;;  %v989_v10 = vshll.u32 %v2984_v48, 30  ;;  %v1070_v2 = vsel %vm1062_vm1, %v1049_v8, %v1052_v59  ;;  %v1071_v35 = vsel %vm1065_vm3, %v1058_v26, 920167782 }
 0x278   :  { %v1074_v21 = vsel %vm1062_vm1, %v1052_v59, %v1055_v11  ;;  %vm1063_vm4 = vcmp.lt.s32.totalorder %v1043_v45, 2  ;;  %v1072_v57 = vsel %vm1064_vm2, %v1055_v11, %v1071_v35  ;;  %v1075_v39 = vsel %vm1065_vm3, %v1061_v34, 1326507024 }
 0x279   :  { %v1990_v33 = vadd.s32 4294967294, %v890_v16  ;;  %v2991_v37 = vsub.s32 %v986_v0, %v989_v10  ;;  %v1046_v40 = vshrl.u32 %v2308_v18, %v1045_v22  ;;  %v1067_v7 = vsel %vm1065_vm3, %v1055_v11, 2102212464 }
 0x27a   :  { %v1076_v54 = vsel %vm1064_vm2, %v1058_v26, %v1075_v39  ;;  %v1073_v51 = vsel %vm1063_vm4, %v1070_v2, %v1072_v57  ;;  %v1068_v53 = vsel %vm1064_vm2, %v1052_v59, %v1067_v7  ;;  %v1144_v38 = vadd.s32 1, %v2000_v32 }
 0x27b   :  { %vm1991_vm5 = vcmp.lt.s32.totalorder %v1990_v33, 0  ;;  %v992_v3 = vsub.s32 0, %v2991_v37  ;;  %v1077_v4 = vsel %vm1063_vm4, %v1074_v21, %v1076_v54  ;;  %v1066_v5 = vsel %vm1062_vm1, %v1046_v40, %v1049_v8 }
 0x27c   :  { %v893_v47 = vsel %vm1991_vm5, 0, %v1990_v33  ;;  %v3002_v9 = vmul.u32.u64.low %v1078_v13, %v1077_v4  ;;  %v3003_v56 = vmul.u32.u64.high %v1078_v13, %v1077_v4, %v3002_v9  ;;  %v878_v14 = vadd.s32 %v2923_v63, %v2920_v62 }
 0x27d   :  { %v898_v58 = vsub.s32 4294967266, %v893_v47  ;;  %v1993_v28 = vmin.u32 %v992_v3, %v2991_v37  ;;  %v894_v22 = vsub.s32 32, %v893_v47  ;;  %v1069_v17 = vsel %vm1063_vm4, %v1066_v5, %v1068_v53 }
 0x27e   :  { %v3005_v1 = vmul.u32.u64.low %v1078_v13, %v1073_v51  ;;  %v3006_v20 = vmul.u32.u64.high %v1078_v13, %v1073_v51, %v3005_v1  ;;  %v1134_v8 = vand.u32 2147483647, %v2876_v60  ;;  %vm1145_vm7 = vcmp.gt.s32.totalorder %v1144_v38, 0 }
 0x27f   :  { %v899_v0 = vadd.s32 127, %v898_v58  ;;  %v994_v49 = vclz %v1993_v28  ;;  %v896_v59 = vshrl.u32 %v878_v14, %v894_v22  ;;  %v1146_v30 = vsel %vm1145_vm7, %v1144_v38, 0 }
 0x280   :  { %vm1087_vm6 = vc.u32 %v3003_v56, %v3005_v1  ;;  %v1088_v11 = vadd.s32 1, %v3006_v20  ;;  %v1085_v31 = vmul.u32 %v1078_v13, %v1069_v17  ;;  %v1148_v15 = vand.u32 31, %v1146_v30 }
 0x281   :  { %v900_v12 = vshll.u32 %v899_v0, 23  ;;  %v1994_v24 = vadd.s32 4294967294, %v994_v49  ;;  %v895_v19 = vshll.u32 %v2971_v61, %v893_v47  ;;  %v1141_v26 = vand.u32 8388607, %v1134_v8 }
 0x282   :  { %v1089_v62 = vsel %vm1087_vm6, %v1088_v11, %v3006_v20  ;;  %v1149_v32 = vsub.s32 32, %v1148_v15  ;;  %v1147_v40 = vshrl.u32 %v1146_v30, 5  ;;  %v1151_v7 = vshll.u32 %v2308_v18, %v1148_v15 }
 0x283   :  { %v901_v16 = vor.u32 4788187, %v900_v12  ;;  %v1090_v63 = vadd.s32 %v1089_v62, %v1085_v31  ;;  %v897_v45 = vor.u32 %v896_v59, %v895_v19  ;;  %vm1995_vm8 = vcmp.lt.s32.totalorder %v1994_v24, 0 }
 0x284   :  { %v3020_v33 = vsel %vm1995_vm8, 0, %v1994_v24  ;;  %v1152_v13 = vshrl.u32 %v2309_v23, %v1149_v32  ;;  %v1158_v61 = vshrl.u32 %v2311_v27, %v1149_v32  ;;  %v1142_v21 = vor.u32 8388608, %v1141_v26 }
 0x285   :  { %v1091_v10 = vadd.s32 536870912, %v1090_v63  ;;  %v902_v34 = vand.u32 2147483647, %v901_v16  ;;  %v904_v35 = vcvt.s32.f32 %v897_v45  ;;  %v1155_v57 = vshrl.u32 %v2310_v25, %v1149_v32 }
 0x286   :  { %v1157_v54 = vshll.u32 %v2310_v25, %v1148_v15  ;;  %v1002_v47 = vsub.s32 4294967266, %v3020_v33  ;;  %v1154_v3 = vshll.u32 %v2309_v23, %v1148_v15  ;;  %v1160_v51 = vshll.u32 %v2311_v27, %v1148_v15 }
 0x287   :  { %v3022_v2 = vshrl.u32 %v1091_v10, 30  ;;  %v1161_v4 = vshrl.u32 %v2312_v29, %v1149_v32  ;;  %v905_v58 = vmul.f32 %v904_v35, %v902_v34  ;;  %v1153_v28 = vor.u32 %v1152_v13, %v1151_v7 }
 0x288   :  { %v1159_v53 = vor.u32 %v1158_v61, %v1157_v54  ;;  %v1156_v9 = vor.u32 %v1155_v57, %v1154_v3  ;;  %v1163_v0 = vshll.u32 %v2312_v29, %v1148_v15  ;;  %v1164_v20 = vshrl.u32 %v2313_v36, %v1149_v32 }
 0x289   :  { %v1093_v39 = vshll.u32 %v3022_v2, 30  ;;  %v1162_v22 = vor.u32 %v1161_v4, %v1160_v51  ;;  %v1003_v38 = vadd.s32 127, %v1002_v47  ;;  %vm1169_vm9 = vcmp.lt.s32.totalorder %v1147_v40, 4 }
 0x28a   :  { %v1165_v14 = vor.u32 %v1164_v20, %v1163_v0  ;;  %v1182_v12 = vshll.u32 %v1142_v21, 8  ;;  %v1150_v59 = vshrl.u32 %v2308_v18, %v1149_v32  ;;  %vm1166_vm10 = vcmp.lt.s32.totalorder %v1147_v40, 1 }
 0x28b   :  { %v1094_v5 = vsub.s32 %v1090_v63, %v1093_v39  ;;  %v1171_v24 = vsel %vm1169_vm9, %v1159_v53, 2102212464  ;;  %v906_v11 = vxor.u32 2147483648, %v905_v58  ;;  %vm1168_vm11 = vcmp.lt.s32.totalorder %v1147_v40, 3 }
 0x28c   :  { %v1174_v30 = vsel %vm1166_vm10, %v1153_v28, %v1156_v9  ;;  %v1175_v31 = vsel %vm1169_vm9, %v1162_v22, 920167782  ;;  %vm1167_vm12 = vcmp.lt.s32.totalorder %v1147_v40, 2  ;;  %v1170_v15 = vsel %vm1166_vm10, %v1150_v59, %v1153_v28 }
 0x28d   :  { %v1096_v49 = vsub.s32 0, %v1094_v5  ;;  %v1176_v16 = vsel %vm1168_vm11, %v1159_v53, %v1175_v31  ;;  %v1172_v62 = vsel %vm1168_vm11, %v1156_v9, %v1171_v24  ;;  %v1178_v45 = vsel %vm1166_vm10, %v1156_v9, %v1159_v53 }
 0x28e   :  { %v1177_v63 = vsel %vm1167_vm12, %v1174_v30, %v1176_v16  ;;  %v1179_v26 = vsel %vm1169_vm9, %v1165_v14, 1326507024  ;;  %vm824_vm13 = vcmp.lt.s32.totalorder %v2855_v42, 0  ;;  %v998_v32 = vsub.s32 32, %v3020_v33 }
 0x28f   :  { %v1997_v17 = vmin.u32 %v1096_v49, %v1094_v5  ;;  %v1180_v34 = vsel %vm1168_vm11, %v1162_v22, %v1179_v26  ;;  %v907_v13 = vsel %vm824_vm13, %v906_v11, %v905_v58  ;;  %v1173_v57 = vsel %vm1167_vm12, %v1170_v15, %v1172_v62 }
 0x290   :  { %v1181_v61 = vsel %vm1167_vm12, %v1178_v45, %v1180_v34  ;;  %v3044_v35 = vmul.u32.u64.low %v1182_v12, %v1177_v63  ;;  %v3045_v21 = vmul.u32.u64.high %v1182_v12, %v1177_v63, %v3044_v35  ;;  %v982_v40 = vadd.s32 %v2951_v6, %v2957_v46 }
 0x291   :  { %v1098_v19 = vclz %v1997_v17  ;;  %v3048_v39 = vmul.u32.u64.low %v1182_v12, %v1181_v61  ;;  %v3049_v7 = vmul.u32.u64.high %v1182_v12, %v1181_v61, %v3048_v39  ;;  %v1004_v54 = vshll.u32 %v1003_v38, 23 }
 0x292   :  { %vm3055_vm15 = vcmp.le.f32.partialorder %v822_v44, 0.7853982  ;;  %v1086_v51 = vadd.s32 %v3005_v1, %v3003_v56  ;;  %v1000_v53 = vshrl.u32 %v982_v40, %v998_v32  ;;  %v1189_v9 = vmul.u32 %v1182_v12, %v1173_v57 }
 0x293   :  { %v1998_v10 = vadd.s32 4294967294, %v1098_v19  ;;  %v910_v28 = vsel %vm3055_vm15, %v2855_v42, %v907_v13  ;;  %v1192_v6 = vadd.s32 1, %v3045_v21  ;;  %vm1191_vm0 = vc.u32 %v3049_v7, %v3044_v35 }
 0x294   :  { %v908_v44 = vsub.s32 4, %v2961_v43  ;;  %v999_v56 = vshll.u32 %v2991_v37, %v3020_v33  ;;  %v1005_v1 = vor.u32 4788187, %v1004_v54  ;;  %2275 = vcosq.f32 %v910_v28 }
 0x295   :  { %vm1999_vm14 = vcmp.lt.s32.totalorder %v1998_v10, 0  ;;  %v1193_v20 = vsel %vm1191_vm0, %v1192_v6, %v3045_v21  ;;  %2277 = vsinq.f32 %v910_v28  ;;  %v1116_v37 = vsub.s32 4, %v3022_v2 }
 0x296   :  { %v1101_v47 = vsel %vm1999_vm14, 0, %v1998_v10  ;;  %v1194_v14 = vadd.s32 %v1193_v20, %v1189_v9  ;;  %v1001_v12 = vor.u32 %v1000_v53, %v999_v56  ;;  %v909_v59 = vsel %vm824_vm13, %v908_v44, %v2961_v43 }
 0x297   :  { %v1102_v4 = vsub.s32 32, %v1101_v47  ;;  %v1106_v58 = vsub.s32 4294967266, %v1101_v47  ;;  %v1103_v46 = vshll.u32 %v1094_v5, %v1101_v47  ;;  %v1006_v24 = vand.u32 2147483647, %v1005_v1 }
 0x298   :  { %v1195_v17 = vadd.s32 536870912, %v1194_v14  ;;  %v911_v33 = vsel %vm3055_vm15, 0, %v909_v59  ;;  %v1008_v19 = vcvt.s32.f32 %v1001_v12  ;;  %vm1032_vm1 = vcmp.lt.s32.totalorder %v2863_v55, 0 }
 0x299   :  { %v1104_v22 = vshrl.u32 %v1086_v51, %v1102_v4  ;;  %v1107_v0 = vadd.s32 127, %v1106_v58  ;;  %v915_v43 = vadd.s32 3, %v911_v33  ;;  %v1117_v26 = vsel %vm1032_vm1, %v1116_v37, %v3022_v2 }
 0x29a   :  { %v3074_v31 = vshrl.u32 %v1195_v17, 30  ;;  %v1009_v62 = vmul.f32 %v1008_v19, %v1006_v24  ;;  %vm1031_vm2 = vcmp.le.f32.partialorder %v1030_v41, 0.7853982  ;;  %vm928_vm3 = vcmp.lt.s32.totalorder %v2859_v50, 0 }
 0x29b   :  { %v1105_v49 = vor.u32 %v1104_v22, %v1103_v46  ;;  %v1108_v38 = vshll.u32 %v1107_v0, 23  ;;  %v1119_v57 = vsel %vm1031_vm2, 0, %v1117_v26  ;;  %v916_v40 = vand.u32 3, %v915_v43 }
 0x29c   :  { %v1197_v16 = vshll.u32 %v3074_v31, 30  ;;  %v1010_v21 = vxor.u32 2147483648, %v1009_v62  ;;  %v1123_v2 = vadd.s32 3, %v1119_v57  ;;  %vm3090_vm6 = vcmp.le.f32.partialorder %v926_v52, 0.7853982 }
 0x29d   :  { %v1109_v5 = vor.u32 4788187, %v1108_v38  ;;  %v1112_v30 = vcvt.s32.f32 %v1105_v49  ;;  %vm918_vm4 = vcmp.eq.s32.totalorder %v916_v40, 0  ;;  %vm921_vm5 = vcmp.eq.s32.totalorder %v916_v40, 2 }
 0x29e   :  { %v1198_v45 = vsub.s32 %v1194_v14, %v1197_v16  ;;  %v2276_v32 = vpop.eup %2275  ;;  %v1011_v41 = vsel %vm928_vm3, %v1010_v21, %v1009_v62  ;;  %v1124_v9 = vand.u32 3, %v1123_v2  ;;  %v1190_v46 = vadd.s32 %v3044_v35, %v3049_v7 }
 0x29f   :  { %v1110_v11 = vand.u32 2147483647, %v1109_v5  ;;  %v2278_v13 = vpop.eup %2277  ;;  %v922_v3 = vxor.u32 2147483648, %v2276_v32  ;;  %v1014_v53 = vsel %vm3090_vm6, %v2859_v50, %v1011_v41  ;;  %vm917_vm8 = vcmp.lt.s32.totalorder %v916_v40, 2 }
 0x2a0   :  { %v1200_v34 = vsub.s32 0, %v1198_v45  ;;  %v919_v47 = vxor.u32 2147483648, %v2278_v13  ;;  %vm914_vm9 = vweird.f32 %v2855_v42  ;;  %v1012_v38 = vsub.s32 4, %v2984_v48 }
 0x2a1   :  { %v1113_v15 = vmul.f32 %v1112_v30, %v1110_v11  ;;  %v923_v28 = vsel %vm921_vm5, %v922_v3, %v2278_v13  ;;  %vm1129_vm10 = vcmp.eq.s32.totalorder %v1124_v9, 2  ;;  %vm1126_vm11 = vcmp.eq.s32.totalorder %v1124_v9, 0 }
 0x2a2   :  { %v2001_v39 = vmin.u32 %v1200_v34, %v1198_v45  ;;  %v920_v58 = vsel %vm918_vm4, %v2276_v32, %v919_v47  ;;  %vm1125_vm12 = vcmp.lt.s32.totalorder %v1124_v9, 2  ;;  %v1013_v11 = vsel %vm928_vm3, %v1012_v38, %v2984_v48 }
 0x2a3   :  { %v1114_v63 = vxor.u32 2147483648, %v1113_v15  ;;  %v924_v44 = vsel %vm917_vm8, %v920_v58, %v923_v28  ;;  %vm1122_vm13 = vweird.f32 %v2863_v55  ;;  %v1238_v16 = vmul.f32 0.5, %v2855_v42 }
 0x2a4   :  { %v1202_v54 = vclz %v2001_v39  ;;  %v925_v17 = vsel %vm914_vm9, nan, %v924_v44  ;;  %v1240_v62 = vmul.f32 0.5, %v2863_v55  ;;  %v1220_v26 = vsub.s32 4, %v3074_v31 }
 0x2a5   :  { %v1115_v10 = vsel %vm1032_vm1, %v1114_v63, %v1113_v15  ;;  %v1242_v37 = vmul.f32 %v925_v17, %v925_v17  ;;  %vm1136_vm14 = vcmp.lt.s32.totalorder %v2876_v60, 0  ;;  %vm1135_vm15 = vcmp.le.f32.partialorder %v1134_v8, 0.7853982 }
 0x2a6   :  { %v1118_v61 = vsel %vm1031_vm2, %v2863_v55, %v1115_v10  ;;  %v2002_v51 = vadd.s32 4294967294, %v1202_v54  ;;  %v1221_v55 = vsel %vm1136_vm14, %v1220_v26, %v3074_v31  ;;  %vm1018_vm3 = vweird.f32 %v2859_v50 }
 0x2a7   :  { %2279 = vcosq.f32 %v1118_v61  ;;  %v1246_v32 = vadd.f32 %v1242_v37, %v1238_v16  ;;  %v1223_v40 = vsel %vm1135_vm15, 0, %v1221_v55  ;;  %v1239_v44 = vmul.f32 0.5, %v2859_v50 }
 0x2a8   :  { %2281 = vsinq.f32 %v1118_v61  ;;  %vm2003_vm7 = vcmp.lt.s32.totalorder %v2002_v51, 0  ;;  %v1227_v3 = vadd.s32 3, %v1223_v40 }
 0x2a9   :  { %v1205_v6 = vsel %vm2003_vm7, 0, %v2002_v51  ;;  %2283 = vcosq.f32 %v1014_v53  ;;  %vm1226_vm7 = vweird.f32 %v2876_v60 }
 0x2aa   :  { %v1206_v22 = vsub.s32 32, %v1205_v6  ;;  %v1210_v0 = vsub.s32 4294967266, %v1205_v6  ;;  %v1207_v56 = vshll.u32 %v1198_v45, %v1205_v6  ;;  %2285 = vsinq.f32 %v1014_v53 }
 0x2ab   :  { %v1015_v45 = vsel %vm3090_vm6, 0, %v1013_v11  ;;  %v1228_v51 = vand.u32 3, %v1227_v3 }
 0x2ac   :  { %v1208_v1 = vshrl.u32 %v1190_v46, %v1206_v22  ;;  %v1211_v20 = vadd.s32 127, %v1210_v0  ;;  %v1019_v13 = vadd.s32 3, %v1015_v45 }
 0x2ad   :  { %vm1233_vm4 = vcmp.eq.s32.totalorder %v1228_v51, 2  ;;  %vm1230_vm5 = vcmp.eq.s32.totalorder %v1228_v51, 0  ;;  %vm1229_vm6 = vcmp.lt.s32.totalorder %v1228_v51, 2 }
 0x2ae   :  { %v1209_v12 = vor.u32 %v1208_v1, %v1207_v56  ;;  %v1212_v5 = vshll.u32 %v1211_v20, 23  ;;  %v1020_v39 = vand.u32 3, %v1019_v13 }
 0x2b0   :  { %v1213_v59 = vor.u32 4788187, %v1212_v5  ;;  %v1216_v19 = vcvt.s32.f32 %v1209_v12  ;;  %vm1022_vm0 = vcmp.eq.s32.totalorder %v1020_v39, 0  ;;  %vm1025_vm1 = vcmp.eq.s32.totalorder %v1020_v39, 2 }
 0x2b1   :  { %v2280_v52 = vpop.eup %2279  ;;  %vm1021_vm2 = vcmp.lt.s32.totalorder %v1020_v39, 2 }
 0x2b2   :  { %v2282_v49 = vpop.eup %2281  ;;  %v1130_v14 = vxor.u32 2147483648, %v2280_v52  ;;  %v1214_v33 = vand.u32 2147483647, %v1213_v59 }
 0x2b3   :  { %v1127_v35 = vxor.u32 2147483648, %v2282_v49  ;;  %v2284_v34 = vpop.eup %2283 }
 0x2b4   :  { %v1131_v7 = vsel %vm1129_vm10, %v1130_v14, %v2282_v49  ;;  %v1217_v43 = vmul.f32 %v1216_v19, %v1214_v33  ;;  %v2286_v21 = vpop.eup %2285  ;;  %v1026_v47 = vxor.u32 2147483648, %v2284_v34 }
 0x2b5   :  { %v1128_v24 = vsel %vm1126_vm11, %v2280_v52, %v1127_v35  ;;  %v1023_v54 = vxor.u32 2147483648, %v2286_v21  ;;  %v1241_v52 = vmul.f32 0.5, %v2876_v60 }
 0x2b6   :  { %v1132_v30 = vsel %vm1125_vm12, %v1128_v24, %v1131_v7  ;;  %v1218_v10 = vxor.u32 2147483648, %v1217_v43  ;;  %v1027_v41 = vsel %vm1025_vm1, %v1026_v47, %v2286_v21 }
 0x2b7   :  { %v1133_v15 = vsel %vm1122_vm13, nan, %v1132_v30  ;;  %v1024_v2 = vsel %vm1022_vm0, %v2284_v34, %v1023_v54 }
 0x2b8   :  { %v1244_v63 = vmul.f32 %v1133_v15, %v1133_v15  ;;  %v1219_v42 = vsel %vm1136_vm14, %v1218_v10, %v1217_v43  ;;  %v1028_v8 = vsel %vm1021_vm2, %v1024_v2, %v1027_v41 }
 0x2b9   :  { %v1222_v57 = vsel %vm1135_vm15, %v2876_v60, %v1219_v42  ;;  %v1029_v28 = vsel %vm1018_vm3, nan, %v1028_v8 }
 0x2ba   :  { %v1248_v48 = vadd.f32 %v1244_v63, %v1240_v62  ;;  %2287 = vcosq.f32 %v1222_v57  ;;  %v1243_v22 = vmul.f32 %v1029_v28, %v1029_v28 }
 0x2bb   :  { %2289 = vsinq.f32 %v1222_v57 }
 0x2bc   :  { %v1250_v61 = vpack.c.bf16 %v1248_v48, %v1246_v32  ;;  %v1247_v1 = vadd.f32 %v1243_v22, %v1239_v44 }
 0x2c4   :  { %v2288_v4 = vpop.eup %2287 }
 0x2c5   :  { %v2290_v58 = vpop.eup %2289  ;;  %v1234_v31 = vxor.u32 2147483648, %v2288_v4 }
 0x2c6   :  { %v1231_v53 = vxor.u32 2147483648, %v2290_v58 }
 0x2c7   :  { %v1235_v9 = vsel %vm1233_vm4, %v1234_v31, %v2290_v58 }
 0x2c8   :  { %v1232_v6 = vsel %vm1230_vm5, %v2288_v4, %v1231_v53 }
 0x2c9   :  { %v1236_v46 = vsel %vm1229_vm6, %v1232_v6, %v1235_v9 }
 0x2ca   :  { %v1237_v0 = vsel %vm1226_vm7, nan, %v1236_v46 }
 0x2cb   :  { %v1245_v56 = vmul.f32 %v1237_v0, %v1237_v0 }
 0x2cd   :  { %v1249_v20 = vadd.f32 %v1245_v56, %v1241_v52 }
 0x2cf   :  { %v1251_v49 = vpack.c.bf16 %v1249_v20, %v1247_v1 }
 0x2d1   :  { %1477 = vmatprep.mubr.bf16.mxu0 %v1251_v49 }
 0x2d2   :  { %1478 = vmatmul.mubr.bf16.vlgmr.msra.gmra.mrb[4].mxu0 %v1250_v61 }
 0x3a5   :  { %v3119_v38 = vpop.f32.mrb[4].mxu0 }
 0x3a6   :  { %v1488_v14 = vand.u32 2147483647, %v3119_v38  ;;  %v1491_v12 = vand.u32 2139095040, %v3119_v38  ;;  %v3123_v5 = vpop.f32.mrb[5].mxu0  ;;  %vm1490_vm5 = vcmp.lt.s32.totalorder %v3119_v38, 0 }
 0x3a7   :  { %v1592_v17 = vand.u32 2147483647, %v3123_v5  ;;  %v1595_v50 = vand.u32 2139095040, %v3123_v5  ;;  %v3127_v35 = vpop.f32.mrb[6].mxu0 }
 0x3a8   :  { %v1492_v60 = vshrl.u32 %v1491_v12, 23  ;;  %v1495_v7 = vand.u32 8388607, %v1488_v14  ;;  %v3131_v59 = vpop.f32.mrb[7].mxu0  ;;  %v1699_v33 = vand.u32 2139095040, %v3127_v35 }
 0x3a9   :  { %v1596_v24 = vshrl.u32 %v1595_v50, 23  ;;  %v1599_v11 = vand.u32 8388607, %v1592_v17  ;;  %v1696_v63 = vand.u32 2147483647, %v3127_v35 }
 0x3aa   :  { %v2068_v30 = vadd.s32 4294967169, %v1492_v60  ;;  %v1496_v19 = vor.u32 8388608, %v1495_v7  ;;  %v1700_v45 = vshrl.u32 %v1699_v33, 23  ;;  %vm3237_vm6 = vcmp.le.f32.partialorder %v1488_v14, 0.7853982 }
 0x3ab   :  { %v2072_v37 = vadd.s32 4294967169, %v1596_v24  ;;  %v1600_v16 = vor.u32 8388608, %v1599_v11  ;;  %v3145_v42 = vand.u32 8388607, %v1696_v63 }
 0x3ac   :  { %v1498_v15 = vadd.s32 1, %v2068_v30  ;;  %v2076_v26 = vadd.s32 4294967169, %v1700_v45  ;;  %v3137_v34 = vshll.u32 %v1496_v19, 8 }
 0x3ad   :  { %v1602_v62 = vadd.s32 1, %v2072_v37  ;;  %v3141_v61 = vshll.u32 %v1600_v16, 8 }
 0x3ae   :  { %vm1499_vm8 = vcmp.gt.s32.totalorder %v1498_v15, 0  ;;  %v3148_v39 = vadd.s32 1, %v2076_v26 }
 0x3af   :  { %v1500_v43 = vsel %vm1499_vm8, %v1498_v15, 0  ;;  %vm1603_vm9 = vcmp.gt.s32.totalorder %v1602_v62, 0 }
 0x3b0   :  { %v1501_v32 = vshrl.u32 %v1500_v43, 5  ;;  %v1502_v48 = vand.u32 31, %v1500_v43  ;;  %v1604_v10 = vsel %vm1603_vm9, %v1602_v62, 0  ;;  %vm1707_vm3 = vcmp.gt.s32.totalorder %v3148_v39, 0 }
 0x3b1   :  { %v3139_v13 = vshrl.u32 %v1604_v10, 5  ;;  %v1606_v57 = vand.u32 31, %v1604_v10 }
 0x3b2   :  { %v1503_v55 = vsub.s32 32, %v1502_v48  ;;  %v1505_v21 = vshll.u32 %v2308_v18, %v1502_v48  ;;  %v1508_v40 = vshll.u32 %v2309_v23, %v1502_v48  ;;  %v1511_v54 = vshll.u32 %v2310_v25, %v1502_v48 }
 0x3b3   :  { %v1514_v47 = vshll.u32 %v2311_v27, %v1502_v48  ;;  %v1517_v3 = vshll.u32 %v2312_v29, %v1502_v48  ;;  %vm1520_vm10 = vcmp.lt.s32.totalorder %v1501_v32, 1  ;;  %vm1521_vm11 = vcmp.lt.s32.totalorder %v1501_v32, 2 }
 0x3b4   :  { %v1506_v2 = vshrl.u32 %v2309_v23, %v1503_v55  ;;  %v1509_v41 = vshrl.u32 %v2310_v25, %v1503_v55  ;;  %v1512_v51 = vshrl.u32 %v2311_v27, %v1503_v55  ;;  %v1504_v8 = vshrl.u32 %v2308_v18, %v1503_v55 }
 0x3b5   :  { %v1515_v4 = vshrl.u32 %v2312_v29, %v1503_v55  ;;  %v1518_v58 = vshrl.u32 %v2313_v36, %v1503_v55  ;;  %v1607_v9 = vsub.s32 32, %v1606_v57  ;;  %vm1522_vm12 = vcmp.lt.s32.totalorder %v1501_v32, 3 }
 0x3b6   :  { %v1507_v31 = vor.u32 %v1506_v2, %v1505_v21  ;;  %v1510_v28 = vor.u32 %v1509_v41, %v1508_v40  ;;  %v1513_v53 = vor.u32 %v1512_v51, %v1511_v54  ;;  %vm1523_vm13 = vcmp.lt.s32.totalorder %v1501_v32, 4 }
 0x3b7   :  { %v1516_v6 = vor.u32 %v1515_v4, %v1514_v47  ;;  %v1519_v46 = vor.u32 %v1518_v58, %v1517_v3  ;;  %v1609_v49 = vshll.u32 %v2308_v18, %v1606_v57  ;;  %v1610_v60 = vshrl.u32 %v2309_v23, %v1607_v9 }
 0x3b8   :  { %v1524_v22 = vsel %vm1520_vm10, %v1504_v8, %v1507_v31  ;;  %v1525_v0 = vsel %vm1523_vm13, %v1513_v53, 2102212464  ;;  %v1528_v44 = vsel %vm1520_vm10, %v1507_v31, %v1510_v28  ;;  %v1532_v52 = vsel %vm1520_vm10, %v1510_v28, %v1513_v53 }
 0x3b9   :  { %v1526_v56 = vsel %vm1522_vm12, %v1510_v28, %v1525_v0  ;;  %v1529_v1 = vsel %vm1523_vm13, %v1516_v6, 920167782  ;;  %v1533_v20 = vsel %vm1523_vm13, %v1519_v46, 1326507024  ;;  %v1612_v7 = vshll.u32 %v2309_v23, %v1606_v57 }
 0x3ba   :  { %v1530_v12 = vsel %vm1522_vm12, %v1513_v53, %v1529_v1  ;;  %v1534_v50 = vsel %vm1522_vm12, %v1516_v6, %v1533_v20  ;;  %v1527_v24 = vsel %vm1521_vm11, %v1524_v22, %v1526_v56  ;;  %v1613_v37 = vshrl.u32 %v2310_v25, %v1607_v9 }
 0x3bb   :  { %v1531_v11 = vsel %vm1521_vm11, %v1528_v44, %v1530_v12  ;;  %v1535_v30 = vsel %vm1521_vm11, %v1532_v52, %v1534_v50  ;;  %v1611_v62 = vor.u32 %v1610_v60, %v1609_v49  ;;  %v1615_v43 = vshll.u32 %v2310_v25, %v1606_v57 }
 0x3bc   :  { %v3171_v33 = vmul.u32.u64.low %v3137_v34, %v1535_v30  ;;  %v3172_v19 = vmul.u32.u64.high %v3137_v34, %v1535_v30, %v3171_v33  ;;  %v3175_v15 = vmul.u32.u64.low %v3137_v34, %v1531_v11  ;;  %v3176_v16 = vmul.u32.u64.high %v3137_v34, %v1531_v11, %v3175_v15 }
 0x3bd   :  { %v1614_v45 = vor.u32 %v1613_v37, %v1612_v7  ;;  %v1616_v26 = vshrl.u32 %v2311_v27, %v1607_v9  ;;  %v1608_v48 = vshrl.u32 %v2308_v18, %v1607_v9  ;;  %v1618_v32 = vshll.u32 %v2311_v27, %v1606_v57 }
 0x3be   :  { %v1619_v10 = vshrl.u32 %v2312_v29, %v1607_v9  ;;  %v1622_v55 = vshrl.u32 %v2313_v36, %v1607_v9  ;;  %v1543_v21 = vmul.u32 %v3137_v34, %v1527_v24  ;;  %v1621_v54 = vshll.u32 %v2312_v29, %v1606_v57 }
 0x3bf   :  { %v1617_v40 = vor.u32 %v1616_v26, %v1615_v43  ;;  %vm1624_vm14 = vcmp.lt.s32.totalorder %v3139_v13, 1  ;;  %vm1545_vm15 = vc.u32 %v3172_v19, %v3175_v15  ;;  %v1546_v47 = vadd.s32 1, %v3176_v16 }
 0x3c0   :  { %v1620_v3 = vor.u32 %v1619_v10, %v1618_v32  ;;  %vm1625_vm0 = vcmp.lt.s32.totalorder %v3139_v13, 2  ;;  %v1623_v2 = vor.u32 %v1622_v55, %v1621_v54  ;;  %vm1626_vm1 = vcmp.lt.s32.totalorder %v3139_v13, 3 }
 0x3c1   :  { %vm1627_vm2 = vcmp.lt.s32.totalorder %v3139_v13, 4  ;;  %v1632_v41 = vsel %vm1624_vm14, %v1611_v62, %v1614_v45  ;;  %v1547_v34 = vsel %vm1545_vm15, %v1546_v47, %v3176_v16  ;;  %v1636_v57 = vsel %vm1624_vm14, %v1614_v45, %v1617_v40 }
 0x3c2   :  { %v1629_v51 = vsel %vm1627_vm2, %v1617_v40, 2102212464  ;;  %v1633_v8 = vsel %vm1627_vm2, %v1620_v3, 920167782  ;;  %v1548_v4 = vadd.s32 %v1547_v34, %v1543_v21  ;;  %v1628_v58 = vsel %vm1624_vm14, %v1608_v48, %v1611_v62 }
 0x3c3   :  { %v1634_v31 = vsel %vm1626_vm1, %v1617_v40, %v1633_v8  ;;  %v1637_v28 = vsel %vm1627_vm2, %v1623_v2, 1326507024  ;;  %v1630_v53 = vsel %vm1626_vm1, %v1614_v45, %v1629_v51  ;;  %v1708_v1 = vsel %vm1707_vm3, %v3148_v39, 0 }
 0x3c4   :  { %v1635_v9 = vsel %vm1625_vm0, %v1632_v41, %v1634_v31  ;;  %v1638_v6 = vsel %vm1626_vm1, %v1620_v3, %v1637_v28  ;;  %v1549_v46 = vadd.s32 536870912, %v1548_v4  ;;  %v1631_v49 = vsel %vm1625_vm0, %v1628_v58, %v1630_v53 }
 0x3c5   :  { %v1639_v22 = vsel %vm1625_vm0, %v1636_v57, %v1638_v6  ;;  %v3199_v0 = vmul.u32.u64.low %v3141_v61, %v1635_v9  ;;  %v3200_v44 = vmul.u32.u64.high %v3141_v61, %v1635_v9, %v3199_v0  ;;  %v1710_v12 = vand.u32 31, %v1708_v1 }
 0x3c6   :  { %v3204_v52 = vmul.u32.u64.low %v3141_v61, %v1639_v22  ;;  %v3205_v56 = vmul.u32.u64.high %v3141_v61, %v1639_v22, %v3204_v52  ;;  %v1550_v20 = vshrl.u32 %v1549_v46, 30  ;;  %v1704_v7 = vor.u32 8388608, %v3145_v42 }
 0x3c7   :  { %v1650_v60 = vadd.s32 1, %v3200_v44  ;;  %v1647_v24 = vmul.u32 %v3141_v61, %v1631_v49  ;;  %v1711_v11 = vsub.s32 32, %v1710_v12  ;;  %v1803_v16 = vand.u32 2139095040, %v3131_v59 }
 0x3c8   :  { %v1551_v50 = vshll.u32 %v1550_v20, 30  ;;  %vm1649_vm4 = vc.u32 %v3205_v56, %v3199_v0  ;;  %v3220_v33 = vshll.u32 %v1704_v7, 8  ;;  %v1544_v42 = vadd.s32 %v3175_v15, %v3172_v19 }
 0x3c9   :  { %v1651_v39 = vsel %vm1649_vm4, %v1650_v60, %v3200_v44  ;;  %v1714_v62 = vshrl.u32 %v2309_v23, %v1711_v11  ;;  %v1717_v45 = vshrl.u32 %v2310_v25, %v1711_v11  ;;  %v3227_v26 = vshrl.u32 %v1708_v1, 5 }
 0x3ca   :  { %v3215_v30 = vsub.s32 %v1548_v4, %v1551_v50  ;;  %v1652_v37 = vadd.s32 %v1651_v39, %v1647_v24  ;;  %v1720_v48 = vshrl.u32 %v2311_v27, %v1711_v11  ;;  %v1723_v32 = vshrl.u32 %v2312_v29, %v1711_v11 }
 0x3cb   :  { %v1574_v10 = vsub.s32 4, %v1550_v20  ;;  %v1713_v21 = vshll.u32 %v2308_v18, %v1710_v12  ;;  %v1716_v19 = vshll.u32 %v2309_v23, %v1710_v12  ;;  %v1719_v54 = vshll.u32 %v2310_v25, %v1710_v12 }
 0x3cc   :  { %v1554_v13 = vsub.s32 0, %v3215_v30  ;;  %v1653_v61 = vadd.s32 536870912, %v1652_v37  ;;  %v1722_v47 = vshll.u32 %v2311_v27, %v1710_v12  ;;  %v1726_v3 = vshrl.u32 %v2313_v36, %v1711_v11 }
 0x3cd   :  { %v1715_v41 = vor.u32 %v1714_v62, %v1713_v21  ;;  %v1718_v34 = vor.u32 %v1717_v45, %v1716_v19  ;;  %v1804_v51 = vshrl.u32 %v1803_v16, 23  ;;  %v1721_v57 = vor.u32 %v1720_v48, %v1719_v54 }
 0x3ce   :  { %v2069_v43 = vmin.u32 %v1554_v13, %v3215_v30  ;;  %v3231_v55 = vshrl.u32 %v1653_v61, 30  ;;  %v1724_v4 = vor.u32 %v1723_v32, %v1722_v47  ;;  %v1725_v14 = vshll.u32 %v2312_v29, %v1710_v12 }
 0x3cf   :  { %v1575_v58 = vsel %vm1490_vm5, %v1574_v10, %v1550_v20  ;;  %v1712_v28 = vshrl.u32 %v2308_v18, %v1711_v11  ;;  %vm1728_vm7 = vcmp.lt.s32.totalorder %v3227_v26, 1  ;;  %vm1729_vm9 = vcmp.lt.s32.totalorder %v3227_v26, 2 }
 0x3d0   :  { %v1556_v40 = vclz %v2069_v43  ;;  %v1655_v2 = vshll.u32 %v3231_v55, 30  ;;  %v1727_v53 = vor.u32 %v1726_v3, %v1725_v14  ;;  %vm1730_vm10 = vcmp.lt.s32.totalorder %v3227_v26, 3 }
 0x3d1   :  { %vm1731_vm11 = vcmp.lt.s32.totalorder %v3227_v26, 4  ;;  %v1736_v46 = vsel %vm1728_vm7, %v1715_v41, %v1718_v34  ;;  %vm1594_vm12 = vcmp.lt.s32.totalorder %v3123_v5, 0  ;;  %v1740_v50 = vsel %vm1728_vm7, %v1718_v34, %v1721_v57 }
 0x3d2   :  { %v2070_v8 = vadd.s32 4294967294, %v1556_v40  ;;  %v3248_v31 = vsub.s32 %v1652_v37, %v1655_v2  ;;  %v1733_v52 = vsel %vm1731_vm11, %v1721_v57, 2102212464  ;;  %v1737_v1 = vsel %vm1731_vm11, %v1724_v4, 920167782 }
 0x3d3   :  { %v1738_v12 = vsel %vm1730_vm10, %v1721_v57, %v1737_v1  ;;  %v1741_v11 = vsel %vm1731_vm11, %v1727_v53, 1326507024  ;;  %v1577_v39 = vsel %vm3237_vm6, 0, %v1575_v58  ;;  %vm3271_vm13 = vcmp.le.f32.partialorder %v1592_v17, 0.7853982 }
 0x3d4   :  { %vm2071_vm8 = vcmp.lt.s32.totalorder %v2070_v8, 0  ;;  %v1658_v6 = vsub.s32 0, %v3248_v31  ;;  %v1739_v24 = vsel %vm1729_vm9, %v1736_v46, %v1738_v12  ;;  %v1678_v13 = vsub.s32 4, %v3231_v55 }
 0x3d5   :  { %v1559_v9 = vsel %vm2071_vm8, 0, %v2070_v8  ;;  %v1732_v16 = vsel %vm1728_vm7, %v1712_v28, %v1715_v41  ;;  %v1734_v62 = vsel %vm1730_vm10, %v1718_v34, %v1733_v52  ;;  %v1742_v45 = vsel %vm1730_vm10, %v1724_v4, %v1741_v11 }
 0x3d6   :  { %v1560_v22 = vsub.s32 32, %v1559_v9  ;;  %v1564_v44 = vsub.s32 4294967266, %v1559_v9  ;;  %v1561_v20 = vshll.u32 %v3215_v30, %v1559_v9  ;;  %v2073_v49 = vmin.u32 %v1658_v6, %v3248_v31 }
 0x3d7   :  { %v1743_v17 = vsel %vm1729_vm9, %v1740_v50, %v1742_v45  ;;  %v3285_v48 = vmul.u32.u64.low %v3220_v33, %v1739_v24  ;;  %v3286_v32 = vmul.u32.u64.high %v3220_v33, %v1739_v24, %v3285_v48  ;;  %v1800_v40 = vand.u32 2147483647, %v3131_v59 }
 0x3d8   :  { %v1562_v60 = vshrl.u32 %v1544_v42, %v1560_v22  ;;  %v1565_v7 = vadd.s32 127, %v1564_v44  ;;  %v1660_v37 = vclz %v2073_v49  ;;  %v1648_v54 = vadd.s32 %v3199_v0, %v3205_v56 }
 0x3d9   :  { %v3290_v21 = vmul.u32.u64.low %v3220_v33, %v1743_v17  ;;  %v3291_v19 = vmul.u32.u64.high %v3220_v33, %v1743_v17, %v3290_v21  ;;  %v1735_v47 = vsel %vm1729_vm9, %v1732_v16, %v1734_v62  ;;  %v2080_v3 = vadd.s32 4294967169, %v1804_v51 }
 0x3da   :  { %v1563_v42 = vor.u32 %v1562_v60, %v1561_v20  ;;  %v1566_v61 = vshll.u32 %v1565_v7, 23  ;;  %v2074_v43 = vadd.s32 4294967294, %v1660_v37  ;;  %v1581_v34 = vadd.s32 3, %v1577_v39 }
 0x3db   :  { %v1679_v14 = vsel %vm1594_vm12, %v1678_v13, %v3231_v55  ;;  %v1754_v58 = vadd.s32 1, %v3286_v32  ;;  %v1751_v0 = vmul.u32 %v3220_v33, %v1735_v47  ;;  %vm1753_vm15 = vc.u32 %v3291_v19, %v3285_v48 }
 0x3dc   :  { %v1567_v10 = vor.u32 4788187, %v1566_v61  ;;  %vm2075_vm14 = vcmp.lt.s32.totalorder %v2074_v43, 0  ;;  %v1570_v41 = vcvt.s32.f32 %v1563_v42  ;;  %v1810_v56 = vadd.s32 1, %v2080_v3 }
 0x3dd   :  { %v1663_v8 = vsel %vm2075_vm14, 0, %v2074_v43  ;;  %v1755_v9 = vsel %vm1753_vm15, %v1754_v58, %v3286_v32  ;;  %v1681_v46 = vsel %vm3271_vm13, 0, %v1679_v14  ;;  %v1807_v50 = vand.u32 8388607, %v1800_v40 }
 0x3de   :  { %v1568_v2 = vand.u32 2147483647, %v1567_v10  ;;  %v1664_v57 = vsub.s32 32, %v1663_v8  ;;  %v1668_v4 = vsub.s32 4294967266, %v1663_v8  ;;  %v1665_v26 = vshll.u32 %v3248_v31, %v1663_v8 }
 0x3df   :  { %v1756_v55 = vadd.s32 %v1755_v9, %v1751_v0  ;;  %vm1811_vm0 = vcmp.gt.s32.totalorder %v1810_v56, 0  ;;  %v1685_v12 = vadd.s32 3, %v1681_v46  ;;  %v3316_v60 = vand.u32 3, %v1581_v34 }
 0x3e0   :  { %v1571_v28 = vmul.f32 %v1570_v41, %v1568_v2  ;;  %v1666_v51 = vshrl.u32 %v1648_v54, %v1664_v57  ;;  %v1669_v53 = vadd.s32 127, %v1668_v4  ;;  %v1812_v52 = vsel %vm1811_vm0, %v1810_v56, 0 }
 0x3e1   :  { %v1757_v1 = vadd.s32 536870912, %v1756_v55  ;;  %v1814_v20 = vand.u32 31, %v1812_v52  ;;  %v3321_v37 = vmul.f32 0.5, %v3119_v38  ;;  %v3325_v42 = vand.u32 3, %v1685_v12 }
 0x3e2   :  { %v1572_v6 = vxor.u32 2147483648, %v1571_v28  ;;  %v1667_v22 = vor.u32 %v1666_v51, %v1665_v26  ;;  %v1670_v44 = vshll.u32 %v1669_v53, 23  ;;  %vm1587_vm1 = vcmp.eq.s32.totalorder %v3316_v60, 2 }
 0x3e3   :  { %v3318_v7 = vshrl.u32 %v1757_v1, 30  ;;  %v1815_v24 = vsub.s32 32, %v1814_v20  ;;  %v1808_v43 = vor.u32 8388608, %v1807_v50  ;;  %v1817_v17 = vshll.u32 %v2308_v18, %v1814_v20 }
 0x3e4   :  { %v1573_v33 = vsel %vm1490_vm5, %v1572_v6, %v1571_v28  ;;  %v1671_v49 = vor.u32 4788187, %v1670_v44  ;;  %v1674_v39 = vcvt.s32.f32 %v1667_v22  ;;  %vm1584_vm2 = vcmp.eq.s32.totalorder %v3316_v60, 0 }
 0x3e5   :  { %v1576_v31 = vsel %vm3237_vm6, %v3119_v38, %v1573_v33  ;;  %v1759_v15 = vshll.u32 %v3318_v7, 30  ;;  %v1818_v13 = vshrl.u32 %v2309_v23, %v1815_v24  ;;  %v1821_v61 = vshrl.u32 %v2310_v25, %v1815_v24 }
 0x3e6   :  { %2291 = vcosq.f32 %v1576_v31  ;;  %v1672_v11 = vand.u32 2147483647, %v1671_v49  ;;  %v1824_v62 = vshrl.u32 %v2311_v27, %v1815_v24  ;;  %v1827_v32 = vshrl.u32 %v2312_v29, %v1815_v24 }
 0x3e7   :  { %2293 = vsinq.f32 %v1576_v31  ;;  %v3330_v45 = vsub.s32 %v1756_v55, %v1759_v15  ;;  %v3335_v21 = vshrl.u32 %v1812_v52, 5  ;;  %v1820_v54 = vshll.u32 %v2309_v23, %v1814_v20 }
 0x3e8   :  { %v1675_v16 = vmul.f32 %v1674_v39, %v1672_v11  ;;  %v1823_v47 = vshll.u32 %v2310_v25, %v1814_v20  ;;  %vm1583_vm3 = vcmp.lt.s32.totalorder %v3316_v60, 2  ;;  %v1752_v3 = vadd.s32 %v3285_v48, %v3291_v19 }
 0x3e9   :  { %v1762_v2 = vsub.s32 0, %v3330_v45  ;;  %v1819_v41 = vor.u32 %v1818_v13, %v1817_v17  ;;  %v1826_v34 = vshll.u32 %v2311_v27, %v1814_v20  ;;  %vm1580_vm4 = vweird.f32 %v3119_v38 }
 0x3ea   :  { %v1676_v10 = vxor.u32 2147483648, %v1675_v16  ;;  %v1822_v57 = vor.u32 %v1821_v61, %v1820_v54  ;;  %v1825_v4 = vor.u32 %v1824_v62, %v1823_v47  ;;  %v1830_v23 = vshrl.u32 %v2313_v36, %v1815_v24 }
 0x3eb   :  { %v2077_v48 = vmin.u32 %v1762_v2, %v3330_v45  ;;  %v1828_v19 = vor.u32 %v1827_v32, %v1826_v34  ;;  %v1829_v14 = vshll.u32 %v2312_v29, %v1814_v20  ;;  %v1816_v27 = vshrl.u32 %v2308_v18, %v1815_v24 }
 0x3ec   :  { %v1677_v8 = vsel %vm1594_vm12, %v1676_v10, %v1675_v16  ;;  %vm1832_vm5 = vcmp.lt.s32.totalorder %v3335_v21, 1  ;;  %v3355_v58 = vshll.u32 %v1808_v43, 8  ;;  %vm1833_vm6 = vcmp.lt.s32.totalorder %v3335_v21, 2 }
 0x3ed   :  { %v1680_v25 = vsel %vm3271_vm13, %v3123_v5, %v1677_v8  ;;  %v1764_v0 = vclz %v2077_v48  ;;  %v1831_v36 = vor.u32 %v1830_v23, %v1829_v14  ;;  %vm1834_vm7 = vcmp.lt.s32.totalorder %v3335_v21, 3 }
 0x3ee   :  { %2295 = vcosq.f32 %v1680_v25  ;;  %vm1835_vm8 = vcmp.lt.s32.totalorder %v3335_v21, 4  ;;  %v1840_v29 = vsel %vm1832_vm5, %v1819_v41, %v1822_v57  ;;  %v1836_v6 = vsel %vm1832_vm5, %v1816_v27, %v1819_v41 }
 0x3ef   :  { %2297 = vsinq.f32 %v1680_v25  ;;  %v2078_v26 = vadd.s32 4294967294, %v1764_v0  ;;  %v1837_v51 = vsel %vm1835_vm8, %v1825_v4, 2102212464  ;;  %v1841_v53 = vsel %vm1835_vm8, %v1828_v19, 920167782 }
 0x3f0   :  { %v2292_v28 = vpop.eup %2291  ;;  %v1842_v46 = vsel %vm1834_vm7, %v1825_v4, %v1841_v53  ;;  %v1844_v55 = vsel %vm1832_vm5, %v1822_v57, %v1825_v4  ;;  %v1845_v52 = vsel %vm1835_vm8, %v1831_v36, 1326507024  ;;  %v1838_v20 = vsel %vm1834_vm7, %v1822_v57, %v1837_v51 }
 0x3f1   :  { %v2294_v30 = vpop.eup %2293  ;;  %v1588_v56 = vxor.u32 2147483648, %v2292_v28  ;;  %vm2079_vm9 = vcmp.lt.s32.totalorder %v2078_v26, 0  ;;  %v1843_v44 = vsel %vm1833_vm6, %v1840_v29, %v1842_v46  ;;  %v1846_v31 = vsel %vm1834_vm7, %v1828_v19, %v1845_v52 }
 0x3f2   :  { %v1585_v18 = vxor.u32 2147483648, %v2294_v30  ;;  %v1767_v1 = vsel %vm2079_vm9, 0, %v2078_v26  ;;  %v1847_v39 = vsel %vm1833_vm6, %v1844_v55, %v1846_v31  ;;  %v1839_v54 = vsel %vm1833_vm6, %v1836_v6, %v1838_v20 }
 0x3f3   :  { %v1589_v9 = vsel %vm1587_vm1, %v1588_v56, %v2294_v30  ;;  %v1768_v12 = vsub.s32 32, %v1767_v1  ;;  %v1769_v50 = vshll.u32 %v3330_v45, %v1767_v1  ;;  %v1772_v24 = vsub.s32 4294967266, %v1767_v1 }
 0x3f4   :  { %v1586_v22 = vsel %vm1584_vm2, %v2292_v28, %v1585_v18  ;;  %v3386_v60 = vmul.u32.u64.low %v3355_v58, %v1843_v44  ;;  %v3387_v15 = vmul.u32.u64.high %v3355_v58, %v1843_v44, %v3386_v60  ;;  %vm1691_vm10 = vcmp.eq.s32.totalorder %v3325_v42, 2 }
 0x3f5   :  { %v1590_v33 = vsel %vm1583_vm3, %v1586_v22, %v1589_v9  ;;  %v1770_v13 = vshrl.u32 %v1752_v3, %v1768_v12  ;;  %v1773_v16 = vadd.s32 127, %v1772_v24  ;;  %vm1684_vm11 = vweird.f32 %v3123_v5 }
 0x3f6   :  { %v1591_v49 = vsel %vm1580_vm4, nan, %v1590_v33  ;;  %v3391_v61 = vmul.u32.u64.low %v3355_v58, %v1847_v39  ;;  %v3392_v62 = vmul.u32.u64.high %v3355_v58, %v1847_v39, %v3391_v61  ;;  %v1858_v3 = vadd.s32 1, %v3387_v15 }
 0x3f7   :  { %v1908_v11 = vmul.f32 %v1591_v49, %v1591_v49  ;;  %v1771_v32 = vor.u32 %v1770_v13, %v1769_v50  ;;  %v1774_v10 = vshll.u32 %v1773_v16, 23  ;;  %vm1688_vm12 = vcmp.eq.s32.totalorder %v3325_v42, 0 }
 0x3f8   :  { %v2296_v38 = vpop.eup %2295  ;;  %vm1687_vm13 = vcmp.lt.s32.totalorder %v3325_v42, 2  ;;  %v1855_v21 = vmul.u32 %v3355_v58, %v1839_v54  ;;  %vm1857_vm14 = vc.u32 %v3392_v62, %v3386_v60  ;;  %v1905_v48 = vmul.f32 0.5, %v3123_v5 }
 0x3f9   :  { %v1912_v43 = vadd.f32 %v1908_v11, %v3321_v37  ;;  %v2298_v45 = vpop.eup %2297  ;;  %v1692_v17 = vxor.u32 2147483648, %v2296_v38  ;;  %v1775_v2 = vor.u32 4788187, %v1774_v10  ;;  %v1778_v57 = vcvt.s32.f32 %v1771_v32 }
 0x3fa   :  { %v1689_v47 = vxor.u32 2147483648, %v2298_v45  ;;  %v1859_v4 = vsel %vm1857_vm14, %v1858_v3, %v3387_v15  ;;  %v1782_v27 = vsub.s32 4, %v3318_v7  ;;  %vm1698_vm15 = vcmp.lt.s32.totalorder %v3127_v35, 0 }
 0x3fb   :  { %1916 = vst [vmem:[%s3438_s3] sm:$0xff] %v1912_v43  ;;  %v1693_v37 = vsel %vm1691_vm10, %v1692_v17, %v2298_v45  ;;  %v1776_v8 = vand.u32 2147483647, %v1775_v2  ;;  %v1860_v25 = vadd.s32 %v1859_v4, %v1855_v21  ;;  %vm1697_vm0 = vcmp.le.f32.partialorder %v1696_v63, 0.7853982 }
 0x3fc   :  { %v1690_v41 = vsel %vm1688_vm12, %v2296_v38, %v1689_v47  ;;  %v1783_v5 = vsel %vm1698_vm15, %v1782_v27, %v3318_v7  ;;  %v1856_v33 = vadd.s32 %v3386_v60, %v3392_v62  ;;  %vm1788_vm4 = vweird.f32 %v3127_v35 }
 0x3fd   :  { %v1694_v34 = vsel %vm1687_vm13, %v1690_v41, %v1693_v37  ;;  %v1779_v14 = vmul.f32 %v1778_v57, %v1776_v8  ;;  %v1861_v42 = vadd.s32 536870912, %v1860_v25  ;;  %v1785_v29 = vsel %vm1697_vm0, 0, %v1783_v5 }
 0x3fe   :  { %v1695_v23 = vsel %vm1684_vm11, nan, %v1694_v34  ;;  %v1789_v51 = vadd.s32 3, %v1785_v29  ;;  %v1906_v39 = vmul.f32 0.5, %v3127_v35  ;;  %vm1802_vm6 = vcmp.lt.s32.totalorder %v3131_v59, 0 }
 0x3ff   :  { %v1909_v19 = vmul.f32 %v1695_v23, %v1695_v23  ;;  %v1780_v0 = vxor.u32 2147483648, %v1779_v14  ;;  %v1862_v58 = vshrl.u32 %v1861_v42, 30  ;;  %vm1801_vm7 = vcmp.le.f32.partialorder %v1800_v40, 0.7853982 }
 0x400   :  { %v1790_v6 = vand.u32 3, %v1789_v51  ;;  %vm1892_vm11 = vweird.f32 %v3131_v59  ;;  %v1907_v4 = vmul.f32 0.5, %v3131_v59 }
 0x401   :  { %v1913_v28 = vadd.f32 %v1909_v19, %v1905_v48  ;;  %v1781_v36 = vsel %vm1698_vm15, %v1780_v0, %v1779_v14  ;;  %v1863_v56 = vshll.u32 %v1862_v58, 30  ;;  %v1886_v45 = vsub.s32 4, %v1862_v58 }
 0x402   :  { %v1784_v30 = vsel %vm1697_vm0, %v3127_v35, %v1781_v36  ;;  %vm1792_vm2 = vcmp.eq.s32.totalorder %v1790_v6, 0  ;;  %vm1795_vm3 = vcmp.eq.s32.totalorder %v1790_v6, 2  ;;  %vm1791_vm5 = vcmp.lt.s32.totalorder %v1790_v6, 2 }
 0x403   :  { %1917 = vst [vmem:[%s3438_s3 + $0x8] sm:$0xff] %v1913_v28  ;;  %2299 = vcosq.f32 %v1784_v30  ;;  %v1864_v18 = vsub.s32 %v1860_v25, %v1863_v56  ;;  %v1887_v32 = vsel %vm1802_vm6, %v1886_v45, %v1862_v58 }
 0x404   :  { %2301 = vsinq.f32 %v1784_v30  ;;  %v1889_v54 = vsel %vm1801_vm7, 0, %v1887_v32 }
 0x405   :  { %v1866_v26 = vsub.s32 0, %v1864_v18  ;;  %v1893_v47 = vadd.s32 3, %v1889_v54 }
 0x407   :  { %v2081_v53 = vmin.u32 %v1866_v26, %v1864_v18  ;;  %v1894_v3 = vand.u32 3, %v1893_v47 }
 0x409   :  { %v1868_v9 = vclz %v2081_v53  ;;  %vm1899_vm8 = vcmp.eq.s32.totalorder %v1894_v3, 2  ;;  %vm1896_vm9 = vcmp.eq.s32.totalorder %v1894_v3, 0  ;;  %vm1895_vm10 = vcmp.lt.s32.totalorder %v1894_v3, 2 }
 0x40b   :  { %v2082_v46 = vadd.s32 4294967294, %v1868_v9 }
 0x40d   :  { %v2300_v55 = vpop.eup %2299  ;;  %vm2083_vm1 = vcmp.lt.s32.totalorder %v2082_v46, 0 }
 0x40e   :  { %v2302_v22 = vpop.eup %2301  ;;  %v1796_v44 = vxor.u32 2147483648, %v2300_v55  ;;  %v1871_v7 = vsel %vm2083_vm1, 0, %v2082_v46 }
 0x40f   :  { %v1793_v63 = vxor.u32 2147483648, %v2302_v22  ;;  %v1872_v1 = vsub.s32 32, %v1871_v7  ;;  %v1876_v20 = vsub.s32 4294967266, %v1871_v7  ;;  %v1873_v12 = vshll.u32 %v1864_v18, %v1871_v7 }
 0x410   :  { %v1797_v52 = vsel %vm1795_vm3, %v1796_v44, %v2302_v22 }
 0x411   :  { %v1794_v31 = vsel %vm1792_vm2, %v2300_v55, %v1793_v63  ;;  %v1874_v50 = vshrl.u32 %v1856_v33, %v1872_v1  ;;  %v1877_v24 = vadd.s32 127, %v1876_v20 }
 0x412   :  { %v1798_v49 = vsel %vm1791_vm5, %v1794_v31, %v1797_v52 }
 0x413   :  { %v1799_v11 = vsel %vm1788_vm4, nan, %v1798_v49  ;;  %v1875_v13 = vor.u32 %v1874_v50, %v1873_v12  ;;  %v1878_v16 = vshll.u32 %v1877_v24, 23 }
 0x414   :  { %v1910_v15 = vmul.f32 %v1799_v11, %v1799_v11 }
 0x415   :  { %v1879_v38 = vor.u32 4788187, %v1878_v16  ;;  %v1882_v62 = vcvt.s32.f32 %v1875_v13 }
 0x416   :  { %v1914_v61 = vadd.f32 %v1910_v15, %v1906_v39 }
 0x417   :  { %v1880_v60 = vand.u32 2147483647, %v1879_v38 }
 0x418   :  { %1918 = vst [vmem:[%s3438_s3 + $0x10] sm:$0xff] %v1914_v61 }
 0x419   :  { %v1883_v43 = vmul.f32 %v1882_v62, %v1880_v60 }
 0x41b   :  { %v1884_v17 = vxor.u32 2147483648, %v1883_v43 }
 0x41d   :  { %v1885_v35 = vsel %vm1802_vm6, %v1884_v17, %v1883_v43 }
 0x41e   :  { %v1888_v10 = vsel %vm1801_vm7, %v3131_v59, %v1885_v35 }
 0x41f   :  { %2303 = vcosq.f32 %v1888_v10 }
 0x420   :  { %2305 = vsinq.f32 %v1888_v10 }
 0x429   :  { %v2304_v37 = vpop.eup %2303 }
 0x42a   :  { %v2306_v2 = vpop.eup %2305  ;;  %v1900_v41 = vxor.u32 2147483648, %v2304_v37 }
 0x42b   :  { %v1897_v21 = vxor.u32 2147483648, %v2306_v2 }
 0x42c   :  { %v1901_v34 = vsel %vm1899_vm8, %v1900_v41, %v2306_v2 }
 0x42d   :  { %v1898_v8 = vsel %vm1896_vm9, %v2304_v37, %v1897_v21 }
 0x42e   :  { %v1902_v40 = vsel %vm1895_vm10, %v1898_v8, %v1901_v34 }
 0x42f   :  { %v1903_v57 = vsel %vm1892_vm11, nan, %v1902_v40 }
 0x430   :  { %v1911_v23 = vmul.f32 %v1903_v57, %v1903_v57 }
 0x432   :  { %v1915_v25 = vadd.f32 %v1911_v23, %v1907_v4 }
 0x434   :  { %1919 = vst [vmem:[%s3438_s3 + $0x18] sm:$0xff] %v1915_v25 }

</bundles_post_ra>
